<compile_context>
chip_gen: v7x
topology: tpu7x:2x2x1
jax: 0.10.0
libtpu: 0.0.40
codegen_flags: <defaults>
</compile_context>

<pallas_src>
import functools

import jax
import jax.numpy as jnp
from jax.experimental import pallas as pl
from jax.experimental.pallas import tpu as pltpu  # noqa: F401  (kept for parity / future grid use)


def _round_up(x, m):
    return ((x + m - 1) // m) * m


# ---------------------------------------------------------------------------
# Fused Pallas kernel: conv1+BN+ReLU -> conv2+BN+ReLU -> conv3(+bias)
# ---------------------------------------------------------------------------
def _fused_rgb_nn_kernel(a1_ref, mask_ref, w1_ref, w2_ref, w3_ref, prm_ref,
                         out_ref, *, N, H, W, Wf, G, PfI, k3, pad3, c_out):
    eps = 1e-5
    inv_m = 1.0 / float(N * H * W)          # BN averages over valid pixels only
    mask = mask_ref[...]                    # (1, PfI): 1.0 at real pixel positions

    def conv(a, w, kk, center):
        # im2col slab (kk*kk*Cin, PfI) from lane-shifted slices of the padded
        # frame buffer `a` (C, 2G+PfI); one bf16 MXU matmul, f32 accumulation.
        pieces = []
        for kh in range(kk):
            for kw in range(kk):
                d = (kh - center) * Wf + (kw - center)
                pieces.append(a[:, G + d:G + d + PfI])
        slab = jnp.concatenate(pieces, axis=0).astype(jnp.bfloat16)
        return jnp.dot(w, slab, preferred_element_type=jnp.float32)

    def bn_relu(y, g, b):
        # training-mode BatchNorm (biased var) over valid pixels, then ReLU,
        # then zero the garbage border / pad positions (mask) so they serve
        # as the next layer's zero padding.
        ym = y * mask
        mean = jnp.sum(ym, axis=1, keepdims=True) * inv_m
        ex2 = jnp.sum(ym * y, axis=1, keepdims=True) * inv_m
        var = ex2 - mean * mean
        z = jnp.maximum((y - mean) * jax.lax.rsqrt(var + eps) * g + b, 0.0)
        return z * mask

    def reframe(z):
        # prepend/append the zero guard columns (lane offsets are multiples of
        # 128, so this is an aligned, write-once construction — no full-slab
        # zero-fill followed by an unaligned rewrite).
        c = z.shape[0]
        zero = jnp.zeros((c, G), jnp.float32)
        return jnp.concatenate([zero, z, zero], axis=1)

    # ---- layer 1: Conv(3->8, 3x3, s1, p1) + BN + ReLU (conv bias cancels) ----
    z1 = bn_relu(conv(a1_ref[...], w1_ref[...], 3, 1),
                 prm_ref[0:8, 0:1], prm_ref[0:8, 1:2])            # (8, PfI)

    # ---- layer 2: Conv(8->16, 3x3, s1, p1) + BN + ReLU ----------------------
    z2 = bn_relu(conv(reframe(z1), w2_ref[...], 3, 1),
                 prm_ref[0:16, 2:3], prm_ref[0:16, 3:4])          # (16, PfI)

    # ---- layer 3: Conv(16->out_channels, k3, pad3) + bias --------------------
    # Dense over frame positions; the wrapper extracts the strided valid pixels.
    y3 = conv(reframe(z2), w3_ref[...], k3, pad3)                 # (c_out, PfI)
    out_ref[...] = y3 + prm_ref[0:c_out, 4:5]


# ---------------------------------------------------------------------------
# Wrapper (layout plumbing in XLA, all math in the Pallas kernel)
# ---------------------------------------------------------------------------
def _flat_weight(w_oihw, cin_pad=None):
    # (Cout, Cin, KH, KW) -> (Cout, KH*KW*Cin_pad) bf16, tap-major / cin-minor
    cout, cin, kh, kw = w_oihw.shape
    w = jnp.transpose(w_oihw, (0, 2, 3, 1)).astype(jnp.float32)
    if cin_pad is not None and cin_pad > cin:
        w = jnp.pad(w, ((0, 0), (0, 0), (0, 0), (0, cin_pad - cin)))
        cin = cin_pad
    return w.reshape(cout, kh * kw * cin).astype(jnp.bfloat16)


def rgb_nn_forward(x_nchw, params, stride, padding):
    N, cin, H, W = x_nchw.shape
    w3 = params["w3"]
    c_out, _, k3, _ = w3.shape

    # Common padded frame for all three layers.
    B = max(1, padding)
    Hf, Wf = H + 2 * B, W + 2 * B
    Pf = N * Hf * Wf
    PfI = _round_up(Pf, 128)                       # lane-dense interior width
    max_shift = max(Wf + 1,                        # 3x3 "same" taps (layers 1/2)
                    padding * (Wf + 1),            # conv3 most-negative tap
                    (k3 - 1 - padding) * (Wf + 1)) # conv3 most-positive tap
    G = _round_up(max(max_shift, 1), 128)          # guard width (lane aligned)
    W_BUF = G + PfI + G
    Ho = (H + 2 * padding - k3) // stride + 1
    Wo = (W + 2 * padding - k3) // stride + 1

    # conv1 input: pad channels 3->8 and spatial by B, flatten to (8, Pf) with
    # the spatial index in the lane axis, then add guard / round-up zeros.
    x = x_nchw.astype(jnp.float32)
    xp = jnp.pad(x, ((0, 0), (0, 8 - cin), (B, B), (B, B)))       # (N,8,Hf,Wf)
    a1 = jnp.transpose(xp, (1, 0, 2, 3)).reshape(8, Pf)
    a1 = jnp.pad(a1, ((0, 0), (G, W_BUF - G - Pf)))               # (8, W_BUF)

    # valid-pixel mask over the interior frame positions (zeros at the border
    # ring, at the Pf..PfI round-up pad, and nowhere else).
    ii = jax.lax.broadcasted_iota(jnp.int32, (Hf, Wf), 0)
    jj = jax.lax.broadcasted_iota(jnp.int32, (Hf, Wf), 1)
    m = ((ii >= B) & (ii < B + H) & (jj >= B) & (jj < B + W)).astype(jnp.float32)
    mask = jnp.broadcast_to(m[None], (N, Hf, Wf)).reshape(1, Pf)
    mask = jnp.pad(mask, ((0, 0), (0, PfI - Pf)))                 # (1, PfI)

    # Flattened bf16 weights (b1/b2 are intentionally NOT used: they cancel in
    # train-mode BN).  Tiny per-channel params packed into one f32 array.
    w1 = _flat_weight(params["w1"], cin_pad=8)                    # (8, 72)
    w2 = _flat_weight(params["w2"])                               # (16, 144)
    w3f = _flat_weight(w3)                                        # (c_out, k3*k3*16)
    rows = max(16, _round_up(c_out, 8))
    prm = jnp.zeros((rows, 8), jnp.float32)
    prm = prm.at[0:8, 0].set(params["g1"].astype(jnp.float32))
    prm = prm.at[0:8, 1].set(params["be1"].astype(jnp.float32))
    prm = prm.at[0:16, 2].set(params["g2"].astype(jnp.float32))
    prm = prm.at[0:16, 3].set(params["be2"].astype(jnp.float32))
    if params["b3"] is not None:
        prm = prm.at[0:c_out, 4].set(params["b3"].astype(jnp.float32))

    kernel = functools.partial(_fused_rgb_nn_kernel,
                               N=N, H=H, W=W, Wf=Wf, G=G, PfI=PfI,
                               k3=k3, pad3=padding, c_out=c_out)

    out_flat = pl.pallas_call(
        kernel,
        out_shape=jax.ShapeDtypeStruct((c_out, PfI), jnp.float32),
    )(a1, mask, w1, w2, w3f, prm)

    # dense frame-indexed conv3 result -> strided valid output pixels -> NCHW
    out = out_flat[:, :Pf].reshape(c_out, N, Hf, Wf)
    out = jnp.transpose(out, (1, 0, 2, 3))
    out = out[:, :, B:B + (Ho - 1) * stride + 1:stride,
              B:B + (Wo - 1) * stride + 1:stride]
    return out


# ---------------------------------------------------------------------------
# Parameter init (PyTorch-style) and demo
# ---------------------------------------------------------------------------
def init_params(key, out_channels, kernel_size, bias):
    ks = jax.random.split(key, 6)

    def conv_init(k, cout, cin, kh, kw):
        fan_in = cin * kh * kw
        bound = 1.0 / jnp.sqrt(fan_in)
        w = jax.random.uniform(k, (cout, cin, kh, kw), jnp.float32, -bound, bound)
        return w, bound

    w1, b1b = conv_init(ks[0], 8, 3, 3, 3)
    b1 = jax.random.uniform(ks[1], (8,), jnp.float32, -b1b, b1b)
    w2, b2b = conv_init(ks[2], 16, 8, 3, 3)
    b2 = jax.random.uniform(ks[3], (16,), jnp.float32, -b2b, b2b)
    w3, b3b = conv_init(ks[4], out_channels, 16, kernel_size, kernel_size)
    b3 = (jax.random.uniform(ks[5], (out_channels,), jnp.float32, -b3b, b3b)
          if bias else None)
    return {
        # b1/b2 kept for module parity; mathematically irrelevant under
        # training-mode BatchNorm, so the kernel does not consume them.
        "w1": w1, "b1": b1, "g1": jnp.ones((8,), jnp.float32),
        "be1": jnp.zeros((8,), jnp.float32),
        "w2": w2, "b2": b2, "g2": jnp.ones((16,), jnp.float32),
        "be2": jnp.zeros((16,), jnp.float32),
        "w3": w3, "b3": b3,
    }


if __name__ == "__main__":
    # RgbNN(out_channels=16, kernel_size=3, stride=1, padding=1, bias=True)
    out_channels, kernel_size, stride, padding, use_bias = 16, 3, 1, 1, True

    key = jax.random.PRNGKey(0)
    kx, kp = jax.random.split(key)
    x = jax.random.normal(kx, (2, 3, 16, 16), jnp.float32)   # NCHW RGB input
    params = init_params(kp, out_channels, kernel_size, use_bias)

    fwd = jax.jit(functools.partial(rgb_nn_forward, stride=stride,
                                    padding=padding))
    out = fwd(x, params)
    jax.block_until_ready(out)
    assert out.shape == (2, out_channels, 16, 16), out.shape
    print("KERNEL_OK")
</pallas_src>

<mosaic_0001>
module attributes {stable_mosaic.version = 11 : i64} {
  func.func @_fused_rgb_nn_kernel(%arg0: memref<8x1024xf32, #tpu.memory_space<vmem>>, %arg1: memref<1x768xf32, #tpu.memory_space<vmem>>, %arg2: memref<8x72xbf16, #tpu.memory_space<vmem>>, %arg3: memref<16x72xbf16, #tpu.memory_space<vmem>>, %arg4: memref<16x144xbf16, #tpu.memory_space<vmem>>, %arg5: memref<16x8xf32, #tpu.memory_space<vmem>>, %arg6: memref<16x768xf32, #tpu.memory_space<vmem>>) attributes {dimension_semantics = [], scalar_prefetch = 0 : i64, scratch_operands = 0 : i64, tpu.core_type = #tpu.core_type<tc>} {
    %c0 = arith.constant 0 : index
    %c0_0 = arith.constant 0 : index
    %0 = vector.load %arg1[%c0, %c0_0] : memref<1x768xf32, #tpu.memory_space<vmem>>, vector<1x768xf32>
    %c0_1 = arith.constant 0 : index
    %c0_2 = arith.constant 0 : index
    %1 = vector.load %arg0[%c0_1, %c0_2] : memref<8x1024xf32, #tpu.memory_space<vmem>>, vector<8x1024xf32>
    %c0_3 = arith.constant 0 : index
    %c0_4 = arith.constant 0 : index
    %2 = vector.load %arg2[%c0_3, %c0_4] : memref<8x72xbf16, #tpu.memory_space<vmem>>, vector<8x72xbf16>
    %3 = vector.extract_strided_slice %1 {offsets = [0, 109], sizes = [8, 768], strides = [1, 1]} : vector<8x1024xf32> to vector<8x768xf32>
    %4 = vector.extract_strided_slice %1 {offsets = [0, 110], sizes = [8, 768], strides = [1, 1]} : vector<8x1024xf32> to vector<8x768xf32>
    %5 = vector.extract_strided_slice %1 {offsets = [0, 111], sizes = [8, 768], strides = [1, 1]} : vector<8x1024xf32> to vector<8x768xf32>
    %6 = vector.extract_strided_slice %1 {offsets = [0, 127], sizes = [8, 768], strides = [1, 1]} : vector<8x1024xf32> to vector<8x768xf32>
    %7 = vector.extract_strided_slice %1 {offsets = [0, 128], sizes = [8, 768], strides = [1, 1]} : vector<8x1024xf32> to vector<8x768xf32>
    %8 = vector.extract_strided_slice %1 {offsets = [0, 129], sizes = [8, 768], strides = [1, 1]} : vector<8x1024xf32> to vector<8x768xf32>
    %9 = vector.extract_strided_slice %1 {offsets = [0, 145], sizes = [8, 768], strides = [1, 1]} : vector<8x1024xf32> to vector<8x768xf32>
    %10 = vector.extract_strided_slice %1 {offsets = [0, 146], sizes = [8, 768], strides = [1, 1]} : vector<8x1024xf32> to vector<8x768xf32>
    %11 = vector.extract_strided_slice %1 {offsets = [0, 147], sizes = [8, 768], strides = [1, 1]} : vector<8x1024xf32> to vector<8x768xf32>
    %12 = tpu.concatenate %3, %4, %5, %6, %7, %8, %9, %10, %11 in 0 : vector<8x768xf32>, vector<8x768xf32>, vector<8x768xf32>, vector<8x768xf32>, vector<8x768xf32>, vector<8x768xf32>, vector<8x768xf32>, vector<8x768xf32>, vector<8x768xf32> -> vector<72x768xf32>
    %13 = arith.truncf %12 : vector<72x768xf32> to vector<72x768xbf16>
    %cst = arith.constant dense<0.000000e+00> : vector<8x768xf32>
    %14 = tpu.matmul %2, %13, %cst {dimension_numbers = #tpu.dot_dimension_numbers<[1], [0], [0], [1], [0, 0, 1, 1], [], []>} : vector<8x72xbf16>, vector<72x768xbf16>, vector<8x768xf32> -> vector<8x768xf32>
    %c0_5 = arith.constant 0 : index
    %c0_6 = arith.constant 0 : index
    %15 = vector.load %arg5[%c0_5, %c0_6] : memref<16x8xf32, #tpu.memory_space<vmem>>, vector<8x1xf32>
    %c0_7 = arith.constant 0 : index
    %c1 = arith.constant 1 : index
    %16 = vector.load %arg5[%c0_7, %c1] : memref<16x8xf32, #tpu.memory_space<vmem>>, vector<8x1xf32>
    %17 = vector.broadcast %0 : vector<1x768xf32> to vector<8x768xf32>
    %18 = arith.mulf %14, %17 : vector<8x768xf32>
    %cst_8 = arith.constant dense<0.000000e+00> : vector<8xf32>
    %19 = vector.multi_reduction <add>, %18, %cst_8 [1] : vector<8x768xf32> to vector<8xf32>
    %20 = vector.shape_cast %19 : vector<8xf32> to vector<8x1xf32>
    %cst_9 = arith.constant 0.001953125 : f32
    %21 = vector.broadcast %cst_9 : f32 to vector<8x1xf32>
    %22 = arith.mulf %20, %21 : vector<8x1xf32>
    %23 = arith.mulf %18, %14 : vector<8x768xf32>
    %cst_10 = arith.constant dense<0.000000e+00> : vector<8xf32>
    %24 = vector.multi_reduction <add>, %23, %cst_10 [1] : vector<8x768xf32> to vector<8xf32>
    %25 = vector.shape_cast %24 : vector<8xf32> to vector<8x1xf32>
    %cst_11 = arith.constant 0.001953125 : f32
    %26 = vector.broadcast %cst_11 : f32 to vector<8x1xf32>
    %27 = arith.mulf %25, %26 : vector<8x1xf32>
    %28 = arith.mulf %22, %22 : vector<8x1xf32>
    %29 = arith.subf %27, %28 : vector<8x1xf32>
    %30 = vector.broadcast %22 : vector<8x1xf32> to vector<8x768xf32>
    %31 = arith.subf %14, %30 : vector<8x768xf32>
    %cst_12 = arith.constant 9.99999974E-6 : f32
    %32 = vector.broadcast %cst_12 : f32 to vector<8x1xf32>
    %33 = arith.addf %29, %32 : vector<8x1xf32>
    %34 = math.rsqrt %33 : vector<8x1xf32>
    %35 = vector.broadcast %34 : vector<8x1xf32> to vector<8x768xf32>
    %36 = arith.mulf %31, %35 : vector<8x768xf32>
    %37 = vector.broadcast %15 : vector<8x1xf32> to vector<8x768xf32>
    %38 = arith.mulf %36, %37 : vector<8x768xf32>
    %39 = vector.broadcast %16 : vector<8x1xf32> to vector<8x768xf32>
    %40 = arith.addf %38, %39 : vector<8x768xf32>
    %cst_13 = arith.constant 0.000000e+00 : f32
    %41 = vector.broadcast %cst_13 : f32 to vector<8x768xf32>
    %42 = arith.maximumf %40, %41 : vector<8x768xf32>
    %43 = vector.broadcast %0 : vector<1x768xf32> to vector<8x768xf32>
    %44 = arith.mulf %42, %43 : vector<8x768xf32>
    %cst_14 = arith.constant 0.000000e+00 : f32
    %45 = vector.broadcast %cst_14 : f32 to vector<8x128xf32>
    %46 = tpu.concatenate %45, %44, %45 in 1 : vector<8x128xf32>, vector<8x768xf32>, vector<8x128xf32> -> vector<8x1024xf32>
    %c0_15 = arith.constant 0 : index
    %c0_16 = arith.constant 0 : index
    %47 = vector.load %arg3[%c0_15, %c0_16] : memref<16x72xbf16, #tpu.memory_space<vmem>>, vector<16x72xbf16>
    %48 = vector.extract_strided_slice %46 {offsets = [0, 109], sizes = [8, 768], strides = [1, 1]} : vector<8x1024xf32> to vector<8x768xf32>
    %49 = vector.extract_strided_slice %46 {offsets = [0, 110], sizes = [8, 768], strides = [1, 1]} : vector<8x1024xf32> to vector<8x768xf32>
    %50 = vector.extract_strided_slice %46 {offsets = [0, 111], sizes = [8, 768], strides = [1, 1]} : vector<8x1024xf32> to vector<8x768xf32>
    %51 = vector.extract_strided_slice %46 {offsets = [0, 127], sizes = [8, 768], strides = [1, 1]} : vector<8x1024xf32> to vector<8x768xf32>
    %52 = vector.extract_strided_slice %46 {offsets = [0, 128], sizes = [8, 768], strides = [1, 1]} : vector<8x1024xf32> to vector<8x768xf32>
    %53 = vector.extract_strided_slice %46 {offsets = [0, 129], sizes = [8, 768], strides = [1, 1]} : vector<8x1024xf32> to vector<8x768xf32>
    %54 = vector.extract_strided_slice %46 {offsets = [0, 145], sizes = [8, 768], strides = [1, 1]} : vector<8x1024xf32> to vector<8x768xf32>
    %55 = vector.extract_strided_slice %46 {offsets = [0, 146], sizes = [8, 768], strides = [1, 1]} : vector<8x1024xf32> to vector<8x768xf32>
    %56 = vector.extract_strided_slice %46 {offsets = [0, 147], sizes = [8, 768], strides = [1, 1]} : vector<8x1024xf32> to vector<8x768xf32>
    %57 = tpu.concatenate %48, %49, %50, %51, %52, %53, %54, %55, %56 in 0 : vector<8x768xf32>, vector<8x768xf32>, vector<8x768xf32>, vector<8x768xf32>, vector<8x768xf32>, vector<8x768xf32>, vector<8x768xf32>, vector<8x768xf32>, vector<8x768xf32> -> vector<72x768xf32>
    %58 = arith.truncf %57 : vector<72x768xf32> to vector<72x768xbf16>
    %cst_17 = arith.constant dense<0.000000e+00> : vector<16x768xf32>
    %59 = tpu.matmul %47, %58, %cst_17 {dimension_numbers = #tpu.dot_dimension_numbers<[1], [0], [0], [1], [0, 0, 1, 1], [], []>} : vector<16x72xbf16>, vector<72x768xbf16>, vector<16x768xf32> -> vector<16x768xf32>
    %c0_18 = arith.constant 0 : index
    %c2 = arith.constant 2 : index
    %60 = vector.load %arg5[%c0_18, %c2] : memref<16x8xf32, #tpu.memory_space<vmem>>, vector<16x1xf32>
    %c0_19 = arith.constant 0 : index
    %c3 = arith.constant 3 : index
    %61 = vector.load %arg5[%c0_19, %c3] : memref<16x8xf32, #tpu.memory_space<vmem>>, vector<16x1xf32>
    %62 = vector.broadcast %0 : vector<1x768xf32> to vector<16x768xf32>
    %63 = arith.mulf %59, %62 : vector<16x768xf32>
    %cst_20 = arith.constant dense<0.000000e+00> : vector<16xf32>
    %64 = vector.multi_reduction <add>, %63, %cst_20 [1] : vector<16x768xf32> to vector<16xf32>
    %65 = vector.shape_cast %64 : vector<16xf32> to vector<16x1xf32>
    %cst_21 = arith.constant 0.001953125 : f32
    %66 = vector.broadcast %cst_21 : f32 to vector<16x1xf32>
    %67 = arith.mulf %65, %66 : vector<16x1xf32>
    %68 = arith.mulf %63, %59 : vector<16x768xf32>
    %cst_22 = arith.constant dense<0.000000e+00> : vector<16xf32>
    %69 = vector.multi_reduction <add>, %68, %cst_22 [1] : vector<16x768xf32> to vector<16xf32>
    %70 = vector.shape_cast %69 : vector<16xf32> to vector<16x1xf32>
    %cst_23 = arith.constant 0.001953125 : f32
    %71 = vector.broadcast %cst_23 : f32 to vector<16x1xf32>
    %72 = arith.mulf %70, %71 : vector<16x1xf32>
    %73 = arith.mulf %67, %67 : vector<16x1xf32>
    %74 = arith.subf %72, %73 : vector<16x1xf32>
    %75 = vector.broadcast %67 : vector<16x1xf32> to vector<16x768xf32>
    %76 = arith.subf %59, %75 : vector<16x768xf32>
    %cst_24 = arith.constant 9.99999974E-6 : f32
    %77 = vector.broadcast %cst_24 : f32 to vector<16x1xf32>
    %78 = arith.addf %74, %77 : vector<16x1xf32>
    %79 = math.rsqrt %78 : vector<16x1xf32>
    %80 = vector.broadcast %79 : vector<16x1xf32> to vector<16x768xf32>
    %81 = arith.mulf %76, %80 : vector<16x768xf32>
    %82 = vector.broadcast %60 : vector<16x1xf32> to vector<16x768xf32>
    %83 = arith.mulf %81, %82 : vector<16x768xf32>
    %84 = vector.broadcast %61 : vector<16x1xf32> to vector<16x768xf32>
    %85 = arith.addf %83, %84 : vector<16x768xf32>
    %cst_25 = arith.constant 0.000000e+00 : f32
    %86 = vector.broadcast %cst_25 : f32 to vector<16x768xf32>
    %87 = arith.maximumf %85, %86 : vector<16x768xf32>
    %88 = vector.broadcast %0 : vector<1x768xf32> to vector<16x768xf32>
    %89 = arith.mulf %87, %88 : vector<16x768xf32>
    %cst_26 = arith.constant 0.000000e+00 : f32
    %90 = vector.broadcast %cst_26 : f32 to vector<16x128xf32>
    %91 = tpu.concatenate %90, %89, %90 in 1 : vector<16x128xf32>, vector<16x768xf32>, vector<16x128xf32> -> vector<16x1024xf32>
    %c0_27 = arith.constant 0 : index
    %c0_28 = arith.constant 0 : index
    %92 = vector.load %arg4[%c0_27, %c0_28] : memref<16x144xbf16, #tpu.memory_space<vmem>>, vector<16x144xbf16>
    %93 = vector.extract_strided_slice %91 {offsets = [0, 109], sizes = [16, 768], strides = [1, 1]} : vector<16x1024xf32> to vector<16x768xf32>
    %94 = vector.extract_strided_slice %91 {offsets = [0, 110], sizes = [16, 768], strides = [1, 1]} : vector<16x1024xf32> to vector<16x768xf32>
    %95 = vector.extract_strided_slice %91 {offsets = [0, 111], sizes = [16, 768], strides = [1, 1]} : vector<16x1024xf32> to vector<16x768xf32>
    %96 = vector.extract_strided_slice %91 {offsets = [0, 127], sizes = [16, 768], strides = [1, 1]} : vector<16x1024xf32> to vector<16x768xf32>
    %97 = vector.extract_strided_slice %91 {offsets = [0, 128], sizes = [16, 768], strides = [1, 1]} : vector<16x1024xf32> to vector<16x768xf32>
    %98 = vector.extract_strided_slice %91 {offsets = [0, 129], sizes = [16, 768], strides = [1, 1]} : vector<16x1024xf32> to vector<16x768xf32>
    %99 = vector.extract_strided_slice %91 {offsets = [0, 145], sizes = [16, 768], strides = [1, 1]} : vector<16x1024xf32> to vector<16x768xf32>
    %100 = vector.extract_strided_slice %91 {offsets = [0, 146], sizes = [16, 768], strides = [1, 1]} : vector<16x1024xf32> to vector<16x768xf32>
    %101 = vector.extract_strided_slice %91 {offsets = [0, 147], sizes = [16, 768], strides = [1, 1]} : vector<16x1024xf32> to vector<16x768xf32>
    %102 = tpu.concatenate %93, %94, %95, %96, %97, %98, %99, %100, %101 in 0 : vector<16x768xf32>, vector<16x768xf32>, vector<16x768xf32>, vector<16x768xf32>, vector<16x768xf32>, vector<16x768xf32>, vector<16x768xf32>, vector<16x768xf32>, vector<16x768xf32> -> vector<144x768xf32>
    %103 = arith.truncf %102 : vector<144x768xf32> to vector<144x768xbf16>
    %cst_29 = arith.constant dense<0.000000e+00> : vector<16x768xf32>
    %104 = tpu.matmul %92, %103, %cst_29 {dimension_numbers = #tpu.dot_dimension_numbers<[1], [0], [0], [1], [0, 0, 1, 1], [], []>} : vector<16x144xbf16>, vector<144x768xbf16>, vector<16x768xf32> -> vector<16x768xf32>
    %c0_30 = arith.constant 0 : index
    %c4 = arith.constant 4 : index
    %105 = vector.load %arg5[%c0_30, %c4] : memref<16x8xf32, #tpu.memory_space<vmem>>, vector<16x1xf32>
    %106 = vector.broadcast %105 : vector<16x1xf32> to vector<16x768xf32>
    %107 = arith.addf %104, %106 : vector<16x768xf32>
    %c0_31 = arith.constant 0 : index
    %c0_32 = arith.constant 0 : index
    %108 = vector.load %arg6[%c0_31, %c0_32] : memref<16x768xf32, #tpu.memory_space<vmem>>, vector<16x768xf32>
    tpu.vector_store %arg6[%c0_31, %c0_32], %107 {strides = array<i32>} : memref<16x768xf32, #tpu.memory_space<vmem>>, vector<16x768xf32>,
    return
  }
}

</mosaic_0001>

<bundles_post_ra>
// kernel: rgb_nn_forward.1
= control target key start
LH: loop header
LB: loop body
LE: loop exit
PB: predicated region body
PF: predicated region fallthrough
CT: control target
= control target key end

     0   :  { %s2911_s29 = smov 126   ;;  %s2912_s30 = smov 127   ;;  %vm55_vm0 = vcmask 1039360   ;;  %vm111_vm1 = vcmask 900096   ;;  %vm83_vm2 = vcmask 1031168   ;;  %vm165_vm3 = vcmask 883712   ;;  %s4763_s0 = inlined_call_operand.vmem [shape: f32[8,1024], index: 0, kind: input, shape index: {}]   ;;  %s4764_s2 = inlined_call_operand.vmem [shape: bf16[8,72], index: 2, kind: input, shape index: {}]   ;;  %s4765_s1 = inlined_call_operand.vmem [shape: f32[1,768], index: 1, kind: input, shape index: {}]   ;;  %s4766_s5 = inlined_call_operand.vmem [shape: f32[16,8], index: 5, kind: input, shape index: {}]   ;;  %s4767_s3 = inlined_call_operand.vmem [shape: bf16[16,72], index: 3, kind: input, shape index: {}]   ;;  %s4768_s4 = inlined_call_operand.vmem [shape: bf16[16,144], index: 4, kind: input, shape index: {}]   ;;  %s4769_s6 = inlined_call_operand.vmem [shape: f32[16,768], index: 6, kind: output, shape index: {}]  }
   0x1   :  { %v2965_v0 = vld [vmem:[%s4763_s0 + $0x8] sm:$0xff]  ;;  %v2970_v1 = vld [vmem:[%s4763_s0 + $0x10] sm:$0xff]  ;;  %v2975_v2 = vld [vmem:[%s4763_s0] sm:$0xff]  ;;  %s2913_s9 = smov 110   ;;  %s2914_s10 = smov 109   ;;  %vm137_vm4 = vcmask 891904  }
   0x2   :  { %v2422_v3 = vpack.i.bf16 %v2970_v1, %v2965_v0  ;;  %v2982_v4 = vld [vmem:[%s4763_s0 + $0x18] sm:$0xff]  ;;  %v2993_v6 = vld [vmem:[%s4763_s0 + $0x20] sm:$0xff]  ;;  %s2915_s11 = smov 108   ;;  %s2916_s12 = smov 92   ;;  %v3010_v8 = vld [vmem:[%s4763_s0 + $0x28] sm:$0xff]  ;;  %vm221_vm5 = vcmask 744448  }
   0x3   :  { %v2427_v5 = vpack.i.bf16 %v2975_v2, %v2982_v4  ;;  %v2447_v7 = vpack.i.bf16 %v2993_v6, %v2982_v4  ;;  %s2917_s13 = smov 91   ;;  %s2918_s16 = smov 90   ;;  %v2487_v9 = vpack.i.bf16 %v3010_v8, %v2993_v6  ;;  %v3020_v10 = vld [vmem:[%s4763_s0 + $0x30] sm:$0xff]  ;;  %v32_v12 = vld [vmem:[%s4763_s0 + $0x38] sm:$0xff]  ;;  %vm193_vm6 = vcmask 752640  }
   0x4   :  { %2423 = vrot.lane.b32.xlu1 %v2422_v3, %s2911_s29  ;;  %2413 = vrot.lane.b32.xlu0 %v2422_v3, %s2912_s30  ;;  %v2507_v11 = vpack.i.bf16 %v3020_v10, %v3010_v8  ;;  %v2527_v13 = vpack.i.bf16 %v32_v12, %v3020_v10  ;;  %s2919_s0 = smov 19   ;;  %vm249_vm7 = vcmask 736256   ;;  %vm403_vm8 = vcmask 154624  }
   0x5   :  { %vm462_vm9 = vcmask 1043456   ;;  %vm458_vm10 = vcmask 588800   ;;  %vm2229_vm11 = vcmask 130048  }
   0x8   :  { %2428 = vrot.lane.b32.xlu1 %v2427_v5, %s2911_s29  ;;  %2418 = vrot.lane.b32.xlu0 %v2427_v5, %s2912_s30 }
   0xc   :  { %2438 = vrot.lane.b32.xlu1 %v2427_v5, %s2913_s9  ;;  %2433 = vrot.lane.b32.xlu0 %v2422_v3, %s2913_s9 }
  0x10   :  { %2448 = vrot.lane.b32.xlu1 %v2447_v7, %s2914_s10  ;;  %2443 = vrot.lane.b32.xlu0 %v2422_v3, %s2914_s10 }
  0x14   :  { %2458 = vrot.lane.b32.xlu1 %v2447_v7, %s2915_s11  ;;  %2453 = vrot.lane.b32.xlu0 %v2422_v3, %s2915_s11 }
  0x18   :  { %2468 = vrot.lane.b32.xlu1 %v2447_v7, %s2916_s12  ;;  %2463 = vrot.lane.b32.xlu0 %v2422_v3, %s2916_s12 }
  0x1c   :  { %2478 = vrot.lane.b32.xlu1 %v2447_v7, %s2917_s13  ;;  %2473 = vrot.lane.b32.xlu0 %v2422_v3, %s2917_s13 }
  0x20   :  { %239 = vrot.lane.b32.xlu1 %v2982_v4, %s2918_s16  ;;  %2483 = vrot.lane.b32.xlu0 %v2422_v3, %s2918_s16 }
  0x24   :  { %53 = vrot.lane.b32.xlu1 %v3020_v10, %s2912_s30  ;;  %2488 = vrot.lane.b32.xlu0 %v2487_v9, %s2912_s30 }
  0x28   :  { %2498 = vrot.lane.b32.xlu1 %v2487_v9, %s2913_s9  ;;  %2493 = vrot.lane.b32.xlu0 %v2487_v9, %s2911_s29 }
  0x2c   :  { %109 = vrot.lane.b32.xlu1 %v3020_v10, %s2913_s9  ;;  %81 = vrot.lane.b32.xlu0 %v3020_v10, %s2911_s29 }
  0x30   :  { %2508 = vrot.lane.b32.xlu1 %v2507_v11, %s2915_s11  ;;  %2503 = vrot.lane.b32.xlu0 %v2507_v11, %s2914_s10 }
  0x34   :  { %2513 = vrot.lane.b32.xlu1 %v2507_v11, %s2916_s12  ;;  %163 = vrot.lane.b32.xlu0 %v32_v12, %s2915_s11 }
  0x38   :  { %191 = vrot.lane.b32.xlu1 %v32_v12, %s2916_s12  ;;  %2518 = vrot.lane.b32.xlu0 %v2507_v11, %s2917_s13 }
  0x3c   :  { %2523 = vrot.lane.b32.xlu1 %v2487_v9, %s2918_s16  ;;  %219 = vrot.lane.b32.xlu0 %v32_v12, %s2917_s13 }
  0x40   :  { %2528 = vrot.lane.b32.xlu0 %v2527_v13, %s2918_s16 }
  0x76   :  { %v3046_v14 = vpop.permute.xlu1 %2423  ;;  %v3048_v15 = vpop.permute.xlu0 %2413 }
  0x77   :  { %v2416_v34 = vunpack.i.h.bf16 %v3048_v15  ;;  %v2426_v42 = vunpack.i.h.bf16 %v3046_v14  ;;  %v2425_v43 = vunpack.i.l.bf16 %v3046_v14  ;;  %v2415_v59 = vunpack.i.l.bf16 %v3048_v15 }
  0x79   :  { %v85_v51 = vsel %vm83_vm2, %v2425_v43, %v2426_v42  ;;  %v57_v13 = vsel %vm55_vm0, %v2415_v59, %v2416_v34 }
  0x7a   :  { %v3050_v16 = vpop.permute.xlu1 %2428  ;;  %v3052_v17 = vpop.permute.xlu0 %2418 }
  0x7b   :  { %v2420_v29 = vunpack.i.l.bf16 %v3052_v17  ;;  %v2431_v50 = vunpack.i.h.bf16 %v3050_v16 }
  0x7d   :  { %v58_v40 = vsel %vm55_vm0, %v2416_v34, %v2420_v29  ;;  %v84_v62 = vsel %vm83_vm2, %v2431_v50, %v2425_v43 }
  0x7e   :  { %v3054_v18 = vpop.permute.xlu1 %2438  ;;  %v3056_v19 = vpop.permute.xlu0 %2433  ;;  %v265_v45 = vpack.c.bf16 %v58_v40, %v2970_v1 }
  0x7f   :  { %v2436_v36 = vunpack.i.h.bf16 %v3056_v19  ;;  %v2435_v37 = vunpack.i.l.bf16 %v3056_v19  ;;  %v2441_v46 = vunpack.i.h.bf16 %v3054_v18 }
  0x81   :  { %v113_v49 = vsel %vm111_vm1, %v2435_v37, %v2436_v36  ;;  %v112_v58 = vsel %vm111_vm1, %v2441_v46, %v2435_v37  ;;  %v2440_v37 = vunpack.i.l.bf16 %v3054_v18 }
  0x82   :  { %v3058_v20 = vpop.permute.xlu1 %2448  ;;  %v3060_v21 = vpop.permute.xlu0 %2443  ;;  %v271_v53 = vpack.c.bf16 %v113_v49, %v85_v51  ;;  %v270_v63 = vpack.c.bf16 %v112_v58, %v84_v62 }
  0x83   :  { %v2445_v24 = vunpack.i.l.bf16 %v3060_v21  ;;  %v2450_v60 = vunpack.i.l.bf16 %v3058_v20  ;;  %v2446_v61 = vunpack.i.h.bf16 %v3060_v21  ;;  %v114_v18 = vsel %vm111_vm1, %v2436_v36, %v2440_v37 }
  0x84   :  { %v2451_v62 = vunpack.i.h.bf16 %v3058_v20 }
  0x85   :  { %v139_v12 = vsel %vm137_vm4, %v2446_v61, %v2450_v60  ;;  %v138_v14 = vsel %vm137_vm4, %v2445_v24, %v2446_v61 }
  0x86   :  { %v3062_v22 = vpop.permute.xlu1 %2458  ;;  %v3064_v23 = vpop.permute.xlu0 %2453 }
  0x87   :  { %v2455_v25 = vunpack.i.l.bf16 %v3064_v23  ;;  %v2460_v54 = vunpack.i.l.bf16 %v3062_v22  ;;  %v2456_v55 = vunpack.i.h.bf16 %v3064_v23  ;;  %v2461_v58 = vunpack.i.h.bf16 %v3062_v22 }
  0x89   :  { %v277_v26 = vpack.c.bf16 %v2455_v25, %v2445_v24  ;;  %v167_v7 = vsel %vm165_vm3, %v2456_v55, %v2460_v54  ;;  %v166_v36 = vsel %vm165_vm3, %v2455_v25, %v2456_v55  ;;  %v4770_v25 = vmov 0  }
  0x8a   :  { %v3072_v27 = vpop.permute.xlu1 %2468  ;;  %v3074_v28 = vpop.permute.xlu0 %2463  ;;  %v279_v15 = vpack.c.bf16 %v167_v7, %v139_v12  ;;  %v278_v23 = vpack.c.bf16 %v166_v36, %v138_v14  ;;  %513 = vmatprep.mubr.bf16.mxu1 %v4770_v25  ;;  %595 = vmatprep.mubr.bf16.mxu0 %v4770_v25 }
  0x8b   :  { %361 = vrot.lane.b32.xlu1 %v277_v26, %s2919_s0  ;;  %v2465_v32 = vunpack.i.l.bf16 %v3074_v28  ;;  %v2466_v11 = vunpack.i.h.bf16 %v3074_v28  ;;  %2532 = vset.pattern.permute.xlu0 %v4770_v25 }
  0x8d   :  { %v194_v40 = vsel %vm193_vm6, %v2465_v32, %v2466_v11 }
  0x8e   :  { %v3078_v30 = vpop.permute.xlu1 %2478  ;;  %v3080_v31 = vpop.permute.xlu0 %2473 }
  0x8f   :  { %v2475_v33 = vunpack.i.l.bf16 %v3080_v31  ;;  %v2476_v1 = vunpack.i.h.bf16 %v3080_v31  ;;  %v2480_v19 = vunpack.i.l.bf16 %v3078_v30 }
  0x91   :  { %v284_v35 = vpack.c.bf16 %v2475_v33, %v2465_v32  ;;  %v222_v31 = vsel %vm221_vm5, %v2475_v33, %v2476_v1 }
  0x92   :  { %v3089_v38 = vpop.permute.xlu1 %239  ;;  %v3091_v39 = vpop.permute.xlu0 %2483  ;;  %v285_v43 = vpack.c.bf16 %v222_v31, %v194_v40  ;;  %v2481_v40 = vunpack.i.h.bf16 %v3078_v30 }
  0x93   :  { %v2485_v41 = vunpack.i.l.bf16 %v3091_v39  ;;  %375 = vrot.lane.b32.xlu0 %v284_v35, %s2919_s0  ;;  %v2486_v26 = vunpack.i.h.bf16 %v3091_v39  ;;  %v264_v35 = vpack.c.bf16 %v57_v13, %v2965_v0  ;;  %v2430_v39 = vunpack.i.l.bf16 %v3050_v16 }
  0x94   :  { %v140_v13 = vsel %vm137_vm4, %v2450_v60, %v2451_v62 }
  0x95   :  { %v291_v44 = vpack.c.bf16 %v2485_v41, %v2485_v41  ;;  %v86_v16 = vsel %vm83_vm2, %v2426_v42, %v2430_v39 }
  0x96   :  { %v3102_v47 = vpop.permute.xlu1 %53  ;;  %v3104_v48 = vpop.permute.xlu0 %2488 }
  0x97   :  { %389 = vrot.lane.b32.xlu1 %v291_v44, %s2919_s0  ;;  %337 = vrot.lane.b32.xlu0 %v265_v45, %s2919_s0  ;;  %v269_v52 = vpack.c.bf16 %v3102_v47, %v3020_v10  ;;  %v2421_v10 = vunpack.i.h.bf16 %v3052_v17  ;;  %v2490_v33 = vunpack.i.l.bf16 %v3104_v48  ;;  %v250_v44 = vsel %vm249_vm7, %v2485_v41, %v2486_v26 }
  0x98   :  { %v292_v28 = vpack.c.bf16 %v250_v44, %v250_v44  ;;  %v2491_v32 = vunpack.i.h.bf16 %v3104_v48  ;;  %v2470_v17 = vunpack.i.l.bf16 %v3072_v27 }
  0x99   :  { %v56_v34 = vsel %vm55_vm0, %v2421_v10, %v2415_v59  ;;  %v59_v41 = vsel %vm55_vm0, %v2420_v29, %v2490_v33 }
  0x9a   :  { %v3119_v56 = vpop.permute.xlu1 %2498  ;;  %v3121_v57 = vpop.permute.xlu0 %2493  ;;  %v263_v0 = vpack.c.bf16 %v56_v34, %v2975_v2  ;;  %v272_v2 = vpack.c.bf16 %v114_v18, %v86_v16  ;;  %v266_v45 = vpack.c.bf16 %v59_v41, %v2982_v4  ;;  %v61_v46 = vsel %vm55_vm0, %v2491_v32, %v3102_v47 }
  0x9b   :  { %345 = vrot.lane.b32.xlu1 %v269_v52, %s2919_s0  ;;  %349 = vrot.lane.b32.xlu0 %v271_v53, %s2919_s0  ;;  %v2500_v29 = vunpack.i.l.bf16 %v3119_v56  ;;  %v2495_v42 = vunpack.i.l.bf16 %v3121_v57  ;;  %v223_v4 = vsel %vm221_vm5, %v2476_v1, %v2480_v19  ;;  %v268_v48 = vpack.c.bf16 %v61_v46, %v3010_v8 }
  0x9c   :  { %v195_v47 = vsel %vm193_vm6, %v2466_v11, %v2470_v17  ;;  %v2501_v52 = vunpack.i.h.bf16 %v3119_v56  ;;  %v2496_v53 = vunpack.i.h.bf16 %v3121_v57  ;;  %v251_v8 = vsel %vm249_vm7, %v2486_v26, %v3089_v38 }
  0x9d   :  { %v87_v49 = vsel %vm83_vm2, %v2430_v39, %v2495_v42  ;;  %v115_v50 = vsel %vm111_vm1, %v2440_v37, %v2500_v29  ;;  %v286_v51 = vpack.c.bf16 %v223_v4, %v195_v47  ;;  %v293_v57 = vpack.c.bf16 %v251_v8, %v251_v8 }
  0x9e   :  { %v3131_v3 = vpop.permute.xlu1 %109  ;;  %v3133_v5 = vpop.permute.xlu0 %81  ;;  %v273_v55 = vpack.c.bf16 %v115_v50, %v87_v49  ;;  %v116_v26 = vsel %vm111_vm1, %v2500_v29, %v2501_v52 }
  0x9f   :  { %v276_v9 = vpack.c.bf16 %v3131_v3, %v3133_v5  ;;  %347 = vrot.lane.b32.xlu0 %v270_v63, %s2919_s0  ;;  %v117_v59 = vsel %vm111_vm1, %v2501_v52, %v3131_v3  ;;  %v89_v61 = vsel %vm83_vm2, %v2496_v53, %v3133_v5  ;;  %v168_v5 = vsel %vm165_vm3, %v2460_v54, %v2461_v58 }
  0xa0   :  { %v275_v10 = vpack.c.bf16 %v117_v59, %v89_v61  ;;  %v280_v54 = vpack.c.bf16 %v168_v5, %v140_v13 }
  0xa1   :  { %359 = vrot.lane.b32.xlu1 %v276_v9, %s2919_s0  ;;  %v60_v9 = vsel %vm55_vm0, %v2490_v33, %v2491_v32 }
  0xa2   :  { %v2509_v21 = vpop.permute.xlu1 %2508  ;;  %v3195_v24 = vpop.permute.xlu0 %2503  ;;  %v267_v12 = vpack.c.bf16 %v60_v9, %v2993_v6  ;;  %v2471_v6 = vunpack.i.h.bf16 %v3072_v27 }
  0xa3   :  { %365 = vrot.lane.b32.xlu0 %v279_v15, %s2919_s0  ;;  %v2511_v1 = vunpack.i.h.bf16 %v2509_v21  ;;  %v2506_v7 = vunpack.i.h.bf16 %v3195_v24  ;;  %v2510_v11 = vunpack.i.l.bf16 %v2509_v21  ;;  %v2505_v3 = vunpack.i.l.bf16 %v3195_v24 }
  0xa4   :  { %v88_v15 = vsel %vm83_vm2, %v2495_v42, %v2496_v53 }
  0xa5   :  { %335 = vrot.lane.b32.xlu1 %v264_v35, %s2919_s0  ;;  %v142_v31 = vsel %vm137_vm4, %v2505_v3, %v2506_v7  ;;  %v170_v35 = vsel %vm165_vm3, %v2510_v11, %v2511_v1  ;;  %v274_v20 = vpack.c.bf16 %v116_v26, %v88_v15  ;;  %v141_v39 = vsel %vm137_vm4, %v2451_v62, %v2505_v3 }
  0xa6   :  { %v2514_v63 = vpop.permute.xlu1 %2513  ;;  %v164_v56 = vpop.permute.xlu0 %163  ;;  %v282_v60 = vpack.c.bf16 %v170_v35, %v142_v31  ;;  %v169_v33 = vsel %vm165_vm3, %v2461_v58, %v2510_v11 }
  0xa7   :  { %377 = vrot.lane.b32.xlu0 %v285_v43, %s2919_s0  ;;  %v2516_v34 = vunpack.i.h.bf16 %v2514_v63  ;;  %v281_v16 = vpack.c.bf16 %v169_v33, %v141_v39  ;;  %v171_v41 = vsel %vm165_vm3, %v2511_v1, %v164_v56 }
  0xa9   :  { %333 = vrot.lane.b32.xlu1 %v263_v0, %s2919_s0  ;;  %v2515_v0 = vunpack.i.l.bf16 %v2514_v63 }
  0xaa   :  { %v192_v37 = vpop.permute.xlu1 %191  ;;  %v2519_v22 = vpop.permute.xlu0 %2518 }
  0xab   :  { %391 = vrot.lane.b32.xlu0 %v292_v28, %s2919_s0  ;;  %v2521_v43 = vunpack.i.h.bf16 %v2519_v22  ;;  %v2520_v18 = vunpack.i.l.bf16 %v2519_v22  ;;  %v224_v28 = vsel %vm221_vm5, %v2480_v19, %v2481_v40  ;;  %v198_v36 = vsel %vm193_vm6, %v2515_v0, %v2516_v34 }
  0xac   :  { %v283_v19 = vpack.c.bf16 %v171_v41, %v2506_v7  ;;  %v197_v27 = vsel %vm193_vm6, %v2471_v6, %v2515_v0  ;;  %v199_v24 = vsel %vm193_vm6, %v2516_v34, %v192_v37 }
  0xad   :  { %351 = vrot.lane.b32.xlu1 %v272_v2, %s2919_s0  ;;  %v196_v2 = vsel %vm193_vm6, %v2470_v17, %v2471_v6 }
  0xae   :  { %v220_v44 = vpop.permute.xlu0 %219  ;;  %v2524_v32 = vpop.permute.xlu1 %2523  ;;  %v287_v14 = vpack.c.bf16 %v224_v28, %v196_v2  ;;  %v33_v28 = vld [vmem:[%s4764_s2] sm:$0xf] }
  0xaf   :  { %339 = vrot.lane.b32.xlu0 %v266_v45, %s2919_s0  ;;  %v226_v45 = vsel %vm221_vm5, %v2520_v18, %v2521_v43  ;;  %v2525_v29 = vunpack.i.l.bf16 %v2524_v32  ;;  %v2526_v46 = vunpack.i.h.bf16 %v2524_v32 }
  0xb0   :  { %v289_v42 = vpack.c.bf16 %v226_v45, %v198_v36 }
  0xb1   :  { %363 = vrot.lane.b32.xlu1 %v278_v23, %s2919_s0  ;;  %v225_v23 = vsel %vm221_vm5, %v2481_v40, %v2520_v18  ;;  %v252_v17 = vsel %vm249_vm7, %v3089_v38, %v2525_v29 }
  0xb2   :  { %v2529_v30 = vpop.permute.xlu0 %2528  ;;  %v288_v21 = vpack.c.bf16 %v225_v23, %v197_v27  ;;  %v294_v49 = vpack.c.bf16 %v252_v17, %v252_v17 }
  0xb3   :  { %343 = vrot.lane.b32.xlu0 %v268_v48, %s2919_s0  ;;  %v2530_v4 = vunpack.i.l.bf16 %v2529_v30  ;;  %v227_v48 = vsel %vm221_vm5, %v2521_v43, %v220_v44  ;;  %v2531_v50 = vunpack.i.h.bf16 %v2529_v30 }
  0xb4   :  { %v290_v52 = vpack.c.bf16 %v227_v48, %v199_v24 }
  0xb5   :  { %379 = vrot.lane.b32.xlu1 %v286_v51, %s2919_s0  ;;  %v254_v47 = vsel %vm249_vm7, %v2526_v46, %v2530_v4  ;;  %v253_v51 = vsel %vm249_vm7, %v2525_v29, %v2526_v46  ;;  %v255_v8 = vsel %vm249_vm7, %v2530_v4, %v2531_v50 }
  0xb6   :  { %v296_v53 = vpack.c.bf16 %v254_v47, %v254_v47  ;;  %v295_v38 = vpack.c.bf16 %v253_v51, %v253_v51 }
  0xb7   :  { %353 = vrot.lane.b32.xlu0 %v273_v55, %s2919_s0  ;;  %v297_v55 = vpack.c.bf16 %v255_v8, %v255_v8 }
  0xb9   :  { %393 = vrot.lane.b32.xlu1 %v293_v57, %s2919_s0 }
  0xbb   :  { %357 = vrot.lane.b32.xlu0 %v275_v10, %s2919_s0 }
  0xbd   :  { %341 = vrot.lane.b32.xlu1 %v267_v12, %s2919_s0 }
  0xbf   :  { %367 = vrot.lane.b32.xlu0 %v280_v54, %s2919_s0 }
  0xc1   :  { %355 = vrot.lane.b32.xlu1 %v274_v20, %s2919_s0 }
  0xc3   :  { %371 = vrot.lane.b32.xlu0 %v282_v60, %s2919_s0 }
  0xc5   :  { %369 = vrot.lane.b32.xlu1 %v281_v16, %s2919_s0 }
  0xc7   :  { %381 = vrot.lane.b32.xlu0 %v287_v14, %s2919_s0 }
  0xc9   :  { %373 = vrot.lane.b32.xlu1 %v283_v19, %s2919_s0 }
  0xcb   :  { %385 = vrot.lane.b32.xlu0 %v289_v42, %s2919_s0 }
  0xcd   :  { %383 = vrot.lane.b32.xlu1 %v288_v21, %s2919_s0 }
  0xcf   :  { %395 = vrot.lane.b32.xlu0 %v294_v49, %s2919_s0 }
  0xd1   :  { %387 = vrot.lane.b32.xlu1 %v290_v52, %s2919_s0 }
  0xd3   :  { %399 = vrot.lane.b32.xlu0 %v296_v53, %s2919_s0 }
  0xd5   :  { %397 = vrot.lane.b32.xlu1 %v295_v38, %s2919_s0 }
  0xd9   :  { %401 = vrot.lane.b32.xlu1 %v297_v55, %s2919_s0 }
  0xfd   :  { %v362_v58 = vpop.permute.xlu1 %361 }
 0x105   :  { %v376_v59 = vpop.permute.xlu0 %375 }
 0x109   :  { %v390_v61 = vpop.permute.xlu1 %389  ;;  %v338_v62 = vpop.permute.xlu0 %337 }
 0x10d   :  { %v350_v63 = vpop.permute.xlu0 %349  ;;  %v346_v56 = vpop.permute.xlu1 %345 }
 0x111   :  { %v348_v57 = vpop.permute.xlu0 %347 }
 0x112   :  { %v410_v31 = vsel %vm403_vm8, %v348_v57, %v350_v63  ;;  %v2921_v57 = vmov 1  }
 0x113   :  { %v360_v1 = vpop.permute.xlu1 %359  ;;  %2533 = vset.pattern.permute.xlu1 %v2921_v57 }
 0x115   :  { %v3270_v7 = vpop.permute.xlu0 %365 }
 0x117   :  { %v336_v9 = vpop.permute.xlu1 %335 }
 0x118   :  { %v405_v10 = vsel %vm403_vm8, %v336_v9, %v338_v62 }
 0x119   :  { %481 = vmatprep.subr.bf16.mxu1 %v405_v10  ;;  %v378_v11 = vpop.permute.xlu0 %377  ;;  %v24_v10 = vld [vmem:[%s4765_s1] sm:$0x3f] }
 0x11a   :  { %v422_v34 = vsel %vm403_vm8, %v376_v59, %v378_v11 }
 0x11b   :  { %v334_v3 = vpop.permute.xlu1 %333 }
 0x11c   :  { %v404_v5 = vsel %vm403_vm8, %v334_v3, %v336_v9 }
 0x11d   :  { %482 = vmatpush1.bf16.msra.mxu1 %v404_v5  ;;  %v392_v12 = vpop.permute.xlu0 %391 }
 0x11e   :  { %v428_v43 = vsel %vm403_vm8, %v390_v61, %v392_v12 }
 0x11f   :  { %v352_v13 = vpop.permute.xlu1 %351  ;;  %v464_v0 = vsel %vm462_vm9, %v428_v43, 0 }
 0x120   :  { %v411_v15 = vsel %vm403_vm8, %v350_v63, %v352_v13 }
 0x121   :  { %483 = vmatprep.subr.bf16.mxu1 %v411_v15  ;;  %v340_v26 = vpop.permute.xlu0 %339 }
 0x122   :  { %484 = vmatpush1.bf16.msra.mxu1 %v410_v31  ;;  %v406_v36 = vsel %vm403_vm8, %v338_v62, %v340_v26 }
 0x123   :  { %v364_v35 = vpop.permute.xlu1 %363 }
 0x124   :  { %v417_v37 = vsel %vm403_vm8, %v364_v35, %v3270_v7  ;;  %v416_v22 = vsel %vm403_vm8, %v362_v58, %v364_v35 }
 0x125   :  { %485 = vmatprep.subr.bf16.mxu1 %v417_v37  ;;  %v344_v54 = vpop.permute.xlu0 %343 }
 0x126   :  { %486 = vmatpush1.bf16.msra.mxu1 %v416_v22  ;;  %v409_v40 = vsel %vm403_vm8, %v344_v54, %v346_v56 }
 0x127   :  { %v380_v6 = vpop.permute.xlu1 %379  ;;  %563 = vmatprep.subr.bf16.mxu0 %v409_v40 }
 0x128   :  { %v423_v20 = vsel %vm403_vm8, %v378_v11, %v380_v6 }
 0x129   :  { %487 = vmatprep.subr.bf16.mxu1 %v423_v20  ;;  %v354_v60 = vpop.permute.xlu0 %353 }
 0x12a   :  { %488 = vmatpush1.bf16.msra.mxu1 %v422_v34  ;;  %v412_v19 = vsel %vm403_vm8, %v352_v13, %v354_v60 }
 0x12b   :  { %v394_v39 = vpop.permute.xlu1 %393 }
 0x12c   :  { %v429_v33 = vsel %vm403_vm8, %v392_v12, %v394_v39 }
 0x12d   :  { %2378 = vmatprep.subr.msk.bf16.mxu1 %vm462_vm9, %v429_v33  ;;  %v358_v44 = vpop.permute.xlu0 %357 }
 0x12e   :  { %490 = vmatpush1.bf16.msra.mxu1 %v464_v0  ;;  %v415_v2 = vsel %vm403_vm8, %v358_v44, %v360_v1  ;;  %v606_v1 = vlaneseq }
 0x12f   :  { %v342_v18 = vpop.permute.xlu1 %341 }
 0x130   :  { %v407_v32 = vsel %vm403_vm8, %v340_v26, %v342_v18  ;;  %v408_v16 = vsel %vm403_vm8, %v342_v18, %v344_v54 }
 0x131   :  { %522 = vmatprep.subr.bf16.mxu1 %v407_v32  ;;  %564 = vmatpush1.bf16.msra.mxu0 %v408_v16  ;;  %v368_v41 = vpop.permute.xlu0 %367 }
 0x132   :  { %2379 = vmatmul.mubr.msk.bf16.vlgmr.msra.gmra.mrb[0].mxu1 %vm458_vm10, %v33_v28  ;;  %565 = vmatprep.subr.bf16.mxu0 %v415_v2  ;;  %v418_v4 = vsel %vm403_vm8, %v3270_v7, %v368_v41  ;;  %v607_v7 = vshrl.u32 %v606_v1, 7 }
 0x133   :  { %523 = vmatpush1.bf16.msra.mxu1 %v406_v36  ;;  %v356_v45 = vpop.permute.xlu1 %355  ;;  %554 = vmatprep.mubr.bf16.mxu1 %v4770_v25 }
 0x134   :  { %v413_v14 = vsel %vm403_vm8, %v354_v60, %v356_v45  ;;  %v414_v30 = vsel %vm403_vm8, %v356_v45, %v358_v44  ;;  %v608_v9 = vsub.s32 0, %v607_v7  ;;  %v612_v11 = vsub.s32 1, %v607_v7 }
 0x135   :  { %524 = vmatprep.subr.bf16.mxu1 %v413_v14  ;;  %566 = vmatpush1.bf16.msra.mxu0 %v414_v30  ;;  %v372_v29 = vpop.permute.xlu0 %371  ;;  %v620_v20 = vsub.s32 3, %v607_v7  ;;  %v624_v34 = vsub.s32 4, %v607_v7 }
 0x136   :  { %v3322_v3 = vrot.slane %v24_v10, %v608_v9  ;;  %v3324_v5 = vrot.slane %v24_v10, %v612_v11 }
 0x137   :  { %525 = vmatpush1.bf16.msra.mxu1 %v412_v19  ;;  %v370_v42 = vpop.permute.xlu1 %369  ;;  %v3338_v43 = vrot.slane %v24_v10, %v620_v20  ;;  %v3341_v18 = vrot.slane %v24_v10, %v624_v34 }
 0x138   :  { %v419_v46 = vsel %vm403_vm8, %v368_v41, %v370_v42  ;;  %v420_v24 = vsel %vm403_vm8, %v370_v42, %v372_v29 }
 0x139   :  { %526 = vmatprep.subr.bf16.mxu1 %v419_v46  ;;  %v382_v23 = vpop.permute.xlu0 %381 }
 0x13a   :  { %v424_v49 = vsel %vm403_vm8, %v380_v6, %v382_v23  ;;  %v616_v6 = vsub.s32 2, %v607_v7 }
 0x13b   :  { %527 = vmatpush1.bf16.msra.mxu1 %v418_v4  ;;  %v374_v27 = vpop.permute.xlu1 %373 }
 0x13c   :  { %v421_v17 = vsel %vm403_vm8, %v372_v29, %v374_v27  ;;  %v3336_v60 = vrot.slane %v24_v10, %v616_v6 }
 0x13d   :  { %567 = vmatprep.subr.bf16.mxu0 %v421_v17  ;;  %v386_v21 = vpop.permute.xlu0 %385 }
 0x13e   :  { %568 = vmatpush1.bf16.msra.mxu0 %v420_v24 }
 0x13f   :  { %v384_v48 = vpop.permute.xlu1 %383 }
 0x140   :  { %v425_v47 = vsel %vm403_vm8, %v382_v23, %v384_v48  ;;  %v426_v53 = vsel %vm403_vm8, %v384_v48, %v386_v21 }
 0x141   :  { %528 = vmatprep.subr.bf16.mxu1 %v425_v47  ;;  %v396_v50 = vpop.permute.xlu0 %395 }
 0x142   :  { %529 = vmatpush1.bf16.msra.mxu1 %v424_v49  ;;  %v430_v38 = vsel %vm403_vm8, %v394_v39, %v396_v50  ;;  %v628_v39 = vsub.s32 5, %v607_v7 }
 0x143   :  { %v388_v51 = vpop.permute.xlu1 %387  ;;  %v470_v59 = vsel %vm462_vm9, %v430_v38, 0 }
 0x144   :  { %v427_v52 = vsel %vm403_vm8, %v386_v21, %v388_v51  ;;  %v3344_v16 = vrot.slane %v24_v10, %v628_v39  ;;  %v2922_v51 = vmov 0.0  }
 0x145   :  { %569 = vmatprep.subr.bf16.mxu0 %v427_v52  ;;  %v400_v55 = vpop.permute.xlu0 %399 }
 0x146   :  { %570 = vmatpush1.bf16.msra.mxu0 %v426_v53 }
 0x147   :  { %v398_v8 = vpop.permute.xlu1 %397 }
 0x148   :  { %v431_v58 = vsel %vm403_vm8, %v396_v50, %v398_v8  ;;  %v432_v61 = vsel %vm403_vm8, %v398_v8, %v400_v55  ;;  %v3355_v50 = vld [vmem:[%s4766_s5] sm:$0xff] }
 0x149   :  { %2380 = vmatprep.subr.msk.bf16.mxu1 %vm462_vm9, %v431_v58  ;;  %v476_v56 = vsel %vm462_vm9, %v432_v61, 0 }
 0x14a   :  { %531 = vmatpush1.bf16.msra.mxu1 %v470_v59 }
 0x14b   :  { %v402_v62 = vpop.permute.xlu1 %401 }
 0x14c   :  { %v433_v63 = vsel %vm403_vm8, %v400_v55, %v402_v62 }
 0x14d   :  { %2381 = vmatmul.mubr.msk.bf16.vlgmr.msra.gmra.mrb[4].mxu1 %vm458_vm10, %v33_v28  ;;  %2382 = vmatprep.subr.msk.bf16.mxu0 %vm462_vm9, %v433_v63 }
 0x14e   :  { %572 = vmatpush1.bf16.msra.mxu0 %v476_v56  ;;  %1187 = vmatprep.mubr.bf16.mxu1 %v4770_v25 }
 0x151   :  { %2383 = vmatmul.mubr.msk.bf16.vlgmr.msra.gmra.mrb[0].mxu0 %vm458_vm10, %v33_v28 }
 0x152   :  { %1230 = vmatprep.mubr.bf16.mxu0 %v4770_v25 }
 0x205   :  { %v3326_v12 = vpop.f32.mrb[0].mxu1 }
 0x206   :  { %v636_v13 = vmul.f32 %v3322_v3, %v3326_v12  ;;  %v3330_v15 = vpop.f32.mrb[1].mxu1 }
 0x207   :  { %v637_v26 = vmul.f32 %v3324_v5, %v3330_v15  ;;  %v519_v31 = vpop.f32.mrb[2].mxu1 }
 0x208   :  { %v650_v35 = vmul.f32 %v636_v13, %v3326_v12  ;;  %v520_v37 = vpop.f32.mrb[3].mxu1 }
 0x209   :  { %v642_v22 = vadd.f32 %v637_v26, %v636_v13  ;;  %v651_v54 = vmul.f32 %v637_v26, %v3330_v15 }
 0x20b   :  { %v656_v40 = vadd.f32 %v651_v54, %v650_v35 }
 0x220   :  { %v556_v33 = vpop.f32.mrb[4].mxu1 }
 0x221   :  { %v638_v44 = vmul.f32 %v3336_v60, %v556_v33  ;;  %v558_v0 = vpop.f32.mrb[5].mxu1 }
 0x222   :  { %v639_v28 = vmul.f32 %v3338_v43, %v558_v0  ;;  %v560_v32 = vpop.f32.mrb[6].mxu1 }
 0x223   :  { %v643_v41 = vadd.f32 %v642_v22, %v638_v44  ;;  %v652_v2 = vmul.f32 %v638_v44, %v556_v33  ;;  %v561_v36 = vpop.f32.mrb[7].mxu1 }
 0x224   :  { %v653_v45 = vmul.f32 %v639_v28, %v558_v0  ;;  %v597_v14 = vpop.f32.mrb[0].mxu0 }
 0x225   :  { %v657_v30 = vadd.f32 %v656_v40, %v652_v2  ;;  %v640_v29 = vmul.f32 %v3341_v18, %v597_v14  ;;  %v3347_v19 = vpop.f32.mrb[1].mxu0  ;;  %v644_v42 = vadd.f32 %v643_v41, %v639_v28 }
 0x226   :  { %v601_v46 = vpop.f32.mrb[2].mxu0  ;;  %v641_v23 = vmul.f32 %v3344_v16, %v3347_v19 }
 0x227   :  { %v654_v4 = vmul.f32 %v640_v29, %v597_v14  ;;  %v602_v27 = vpop.f32.mrb[3].mxu0  ;;  %v645_v17 = vadd.f32 %v644_v42, %v640_v29  ;;  %v658_v21 = vadd.f32 %v657_v30, %v653_v45 }
 0x228   :  { %v655_v24 = vmul.f32 %v641_v23, %v3347_v19 }
 0x229   :  { %v646_v48 = vadd.f32 %v645_v17, %v641_v23  ;;  %v659_v47 = vadd.f32 %v658_v21, %v654_v4 }
 0x22b   :  { %647 = vadd.xlane.f32.xlu0 %v646_v48  ;;  %v660_v49 = vadd.f32 %v659_v47, %v655_v24 }
 0x22d   :  { %661 = vadd.xlane.f32.xlu1 %v660_v49 }
 0x23e   :  { %692 = vperm.xlu1 %2533, %v3355_v50  }
 0x241   :  { %682 = vperm.xlu0 %2532, %v3355_v50  }
 0x242   :  { %866 = vrot.lane.b32.xlu1 %v2922_v51, %s2916_s12 }
 0x245   :  { %839 = vrot.lane.b32.xlu0 %v2922_v51, %s2915_s11 }
 0x249   :  { %893 = vrot.lane.b32.xlu0 %v2922_v51, %s2917_s13 }
 0x2b8   :  { %v648_v52 = vpop.xlane.xlu0 %647 }
 0x2b9   :  { %v649_v53 = vmul.f32 0.001953125, %v648_v52 }
 0x2ba   :  { %v662_v38 = vpop.xlane.xlu1 %661 }
 0x2bb   :  { %v663_v8 = vmul.f32 0.001953125, %v662_v38  ;;  %v664_v55 = vmul.f32 %v649_v53, %v649_v53  ;;  %v666_v61 = vsub.f32 %v3326_v12, %v649_v53  ;;  %v667_v62 = vsub.f32 %v3330_v15, %v649_v53 }
 0x2bc   :  { %v668_v63 = vsub.f32 %v556_v33, %v649_v53  ;;  %v669_v31 = vsub.f32 %v558_v0, %v649_v53  ;;  %v670_v35 = vsub.f32 %v597_v14, %v649_v53  ;;  %v671_v14 = vsub.f32 %v3347_v19, %v649_v53 }
 0x2bd   :  { %v665_v58 = vsub.f32 %v663_v8, %v664_v55 }
 0x2be   :  { %v693_v10 = vpop.permute.xlu1 %692 }
 0x2bf   :  { %v672_v59 = vadd.f32 1e-05, %v665_v58 }
 0x2c0   :  { %v683_v57 = vpop.permute.xlu0 %682 }
 0x2c1   :  { %2903 = vrsqrt.f32 %v672_v59 }
 0x2c2   :  { %v3432_v47 = vpop.permute.xlu1 %866 }
 0x2c3   :  { %4828 = vst [vmem:[#allocation3_spill] sm:$0xff] %v3432_v47 }
 0x2c4   :  { %v3430_v48 = vpop.permute.xlu0 %839 }
 0x2c5   :  { %4827 = vst [vmem:[#allocation2_spill] sm:$0xff] %v3430_v48 }
 0x2c8   :  { %v3434_v49 = vpop.permute.xlu0 %893 }
 0x2c9   :  { %4829 = vst [vmem:[#allocation4_spill] sm:$0xff] %v3434_v49 }
 0x2cb   :  { %v2904_v56 = vpop.eup %2903 }
 0x2cc   :  { %v674_v1 = vmul.f32 %v2904_v56, %v666_v61  ;;  %v675_v7 = vmul.f32 %v2904_v56, %v667_v62  ;;  %v676_v9 = vmul.f32 %v2904_v56, %v668_v63  ;;  %v677_v40 = vmul.f32 %v2904_v56, %v669_v31 }
 0x2cd   :  { %v678_v6 = vmul.f32 %v2904_v56, %v670_v35  ;;  %v679_v30 = vmul.f32 %v2904_v56, %v671_v14 }
 0x2ce   :  { %v685_v11 = vmul.f32 %v683_v57, %v674_v1  ;;  %v686_v13 = vmul.f32 %v683_v57, %v675_v7  ;;  %v687_v26 = vmul.f32 %v683_v57, %v676_v9  ;;  %v688_v33 = vmul.f32 %v683_v57, %v677_v40 }
 0x2cf   :  { %v689_v44 = vmul.f32 %v683_v57, %v678_v6  ;;  %v690_v46 = vmul.f32 %v683_v57, %v679_v30 }
 0x2d0   :  { %v695_v37 = vadd.f32 %v693_v10, %v685_v11  ;;  %v696_v22 = vadd.f32 %v693_v10, %v686_v13  ;;  %v697_v54 = vadd.f32 %v693_v10, %v687_v26  ;;  %v698_v32 = vadd.f32 %v693_v10, %v688_v33 }
 0x2d1   :  { %v699_v41 = vadd.f32 %v693_v10, %v689_v44  ;;  %v700_v19 = vadd.f32 %v693_v10, %v690_v46 }
 0x2d2   :  { %v701_v12 = vmax.f32 %v695_v37, 0.0  ;;  %v702_v20 = vmax.f32 %v696_v22, 0.0  ;;  %v703_v15 = vmax.f32 %v697_v54, 0.0  ;;  %v704_v36 = vmax.f32 %v698_v32, 0.0 }
 0x2d3   :  { %v705_v45 = vmax.f32 %v699_v41, 0.0  ;;  %v706_v4 = vmax.f32 %v700_v19, 0.0 }
 0x2d4   :  { %v3368_v34 = vmul.f32 %v701_v12, %v3322_v3  ;;  %v3371_v39 = vmul.f32 %v702_v20, %v3324_v5  ;;  %v3374_v28 = vmul.f32 %v703_v15, %v3336_v60  ;;  %v3388_v29 = vmul.f32 %v704_v36, %v3338_v43 }
 0x2d5   :  { %v3391_v42 = vmul.f32 %v705_v45, %v3341_v18  ;;  %v3407_v17 = vmul.f32 %v706_v4, %v3344_v16 }
 0x2d6   :  { %v2564_v0 = vpack.i.bf16 %v3371_v39, %v3368_v34  ;;  %v2539_v2 = vpack.i.bf16 %v2922_v51, %v3374_v28  ;;  %v2569_v27 = vpack.i.bf16 %v3388_v29, %v3374_v28 }
 0x2d7   :  { %v2604_v23 = vpack.i.bf16 %v3391_v42, %v3388_v29  ;;  %v2624_v21 = vpack.i.bf16 %v3407_v17, %v3391_v42  ;;  %v2649_v24 = vpack.i.bf16 %v2922_v51, %v3407_v17 }
 0x2d8   :  { %2565 = vrot.lane.b32.xlu0 %v2564_v0, %s2914_s10  ;;  %2535 = vrot.lane.b32.xlu1 %v2564_v0, %s2912_s30 }
 0x2dc   :  { %2575 = vrot.lane.b32.xlu0 %v2564_v0, %s2915_s11  ;;  %2540 = vrot.lane.b32.xlu1 %v2539_v2, %s2912_s30 }
 0x2e0   :  { %2585 = vrot.lane.b32.xlu0 %v2564_v0, %s2916_s12  ;;  %2545 = vrot.lane.b32.xlu1 %v2564_v0, %s2911_s29 }
 0x2e4   :  { %2595 = vrot.lane.b32.xlu0 %v2564_v0, %s2917_s13  ;;  %2550 = vrot.lane.b32.xlu1 %v2539_v2, %s2911_s29 }
 0x2e8   :  { %2605 = vrot.lane.b32.xlu0 %v2604_v23, %s2912_s30  ;;  %2555 = vrot.lane.b32.xlu1 %v2564_v0, %s2913_s9 }
 0x2ec   :  { %912 = vrot.lane.b32.xlu0 %v3374_v28, %s2918_s16  ;;  %2560 = vrot.lane.b32.xlu1 %v2539_v2, %s2913_s9 }
 0x2f0   :  { %2615 = vrot.lane.b32.xlu0 %v2604_v23, %s2911_s29  ;;  %2570 = vrot.lane.b32.xlu1 %v2569_v27, %s2914_s10 }
 0x2f4   :  { %761 = vrot.lane.b32.xlu0 %v3407_v17, %s2911_s29  ;;  %2580 = vrot.lane.b32.xlu1 %v2569_v27, %s2915_s11 }
 0x2f8   :  { %2625 = vrot.lane.b32.xlu0 %v2624_v21, %s2914_s10  ;;  %2590 = vrot.lane.b32.xlu1 %v2569_v27, %s2916_s12 }
 0x2fc   :  { %2640 = vrot.lane.b32.xlu0 %v2624_v21, %s2917_s13  ;;  %2600 = vrot.lane.b32.xlu1 %v2569_v27, %s2917_s13 }
 0x300   :  { %2650 = vrot.lane.b32.xlu0 %v2649_v24, %s2918_s16  ;;  %2610 = vrot.lane.b32.xlu1 %v2564_v0, %s2918_s16 }
 0x304   :  { %734 = vrot.lane.b32.xlu1 %v3407_v17, %s2912_s30 }
 0x308   :  { %2620 = vrot.lane.b32.xlu1 %v2604_v23, %s2913_s9 }
 0x30c   :  { %788 = vrot.lane.b32.xlu1 %v3407_v17, %s2913_s9 }
 0x310   :  { %2630 = vrot.lane.b32.xlu1 %v2624_v21, %s2915_s11 }
 0x314   :  { %2635 = vrot.lane.b32.xlu1 %v2624_v21, %s2916_s12 }
 0x318   :  { %2645 = vrot.lane.b32.xlu1 %v2604_v23, %s2918_s16 }
 0x34a   :  { %v3436_v52 = vpop.permute.xlu1 %2535  ;;  %v3438_v53 = vpop.permute.xlu0 %2565 }
 0x34b   :  { %v2567_v55 = vunpack.i.l.bf16 %v3438_v53  ;;  %v2538_v9 = vunpack.i.h.bf16 %v3436_v52  ;;  %v2568_v2 = vunpack.i.h.bf16 %v3438_v53 }
 0x34e   :  { %v3440_v38 = vpop.permute.xlu1 %2540  ;;  %v3442_v8 = vpop.permute.xlu0 %2575 }
 0x34f   :  { %v2577_v58 = vunpack.i.l.bf16 %v3442_v8  ;;  %v2542_v63 = vunpack.i.l.bf16 %v3440_v38  ;;  %v2578_v36 = vunpack.i.h.bf16 %v3442_v8 }
 0x351   :  { %v949_v59 = vpack.c.bf16 %v2577_v58, %v2567_v55  ;;  %v738_v11 = vsel %vm55_vm0, %v2538_v9, %v2542_v63 }
 0x352   :  { %v3450_v61 = vpop.permute.xlu1 %2545  ;;  %v3452_v62 = vpop.permute.xlu0 %2585  ;;  %v937_v22 = vpack.c.bf16 %v738_v11, %v3371_v39 }
 0x353   :  { %1038 = vrot.lane.b32.xlu1 %v949_v59, %s2919_s0  ;;  %v2587_v1 = vunpack.i.l.bf16 %v3452_v62  ;;  %v2548_v35 = vunpack.i.h.bf16 %v3450_v61  ;;  %v2547_v37 = vunpack.i.l.bf16 %v3450_v61  ;;  %v2588_v46 = vunpack.i.h.bf16 %v3452_v62 }
 0x355   :  { %v764_v12 = vsel %vm83_vm2, %v2547_v37, %v2548_v35 }
 0x356   :  { %v3456_v56 = vpop.permute.xlu1 %2550  ;;  %v3458_v57 = vpop.permute.xlu0 %2595 }
 0x357   :  { %v2597_v7 = vunpack.i.l.bf16 %v3458_v57  ;;  %v3489_v20 = vunpack.i.h.bf16 %v3456_v56  ;;  %v2598_v45 = vunpack.i.h.bf16 %v3458_v57 }
 0x359   :  { %v956_v10 = vpack.c.bf16 %v2597_v7, %v2587_v1  ;;  %v763_v44 = vsel %vm83_vm2, %v3489_v20, %v2547_v37  ;;  %v895_v21 = vsel %vm221_vm5, %v2597_v7, %v2598_v45 }
 0x35a   :  { %v3468_v13 = vpop.permute.xlu1 %2555  ;;  %v3506_v30 = vpop.permute.xlu0 %2605 }
 0x35b   :  { %v2558_v26 = vunpack.i.h.bf16 %v3468_v13  ;;  %v2557_v31 = vunpack.i.l.bf16 %v3468_v13  ;;  %1052 = vrot.lane.b32.xlu0 %v956_v10, %s2919_s0  ;;  %v2608_v24 = vunpack.i.h.bf16 %v3506_v30  ;;  %v2607_v59 = vunpack.i.l.bf16 %v3506_v30 }
 0x35c   :  { %v868_v10 = vsel %vm193_vm6, %v2587_v1, %v2588_v46 }
 0x35d   :  { %v791_v54 = vsel %vm111_vm1, %v2557_v31, %v2558_v26  ;;  %v740_v37 = vsel %vm55_vm0, %v2607_v59, %v2608_v24  ;;  %v739_v57 = vsel %vm55_vm0, %v2542_v63, %v2607_v59 }
 0x35e   :  { %v3479_v40 = vpop.permute.xlu1 %2560  ;;  %v943_v15 = vpack.c.bf16 %v791_v54, %v764_v12  ;;  %v939_v54 = vpack.c.bf16 %v740_v37, %v3388_v29 }
 0x35f   :  { %v3482_v6 = vunpack.i.h.bf16 %v3479_v40  ;;  %1014 = vrot.lane.b32.xlu0 %v937_v22, %s2919_s0  ;;  %v3533_v22 = vpop.permute.xlu0 %912  ;;  %v2562_v37 = vunpack.i.l.bf16 %v3479_v40 }
 0x361   :  { %v790_v39 = vsel %vm111_vm1, %v3482_v6, %v2557_v31  ;;  %v957_v31 = vpack.c.bf16 %v895_v21, %v868_v10 }
 0x362   :  { %v3493_v33 = vpop.permute.xlu1 %2570  ;;  %v942_v32 = vpack.c.bf16 %v790_v39, %v763_v44 }
 0x363   :  { %1026 = vrot.lane.b32.xlu0 %v943_v15, %s2919_s0  ;;  %v2572_v0 = vunpack.i.l.bf16 %v3493_v33  ;;  %v3545_v44 = vpop.permute.xlu0 %2615 }
 0x364   :  { %v4771_v29 = vunpack.i.l.bf16 %v3545_v44 }
 0x365   :  { %v816_v23 = vsel %vm137_vm4, %v2568_v2, %v2572_v0 }
 0x366   :  { %v3499_v41 = vpop.permute.xlu1 %2580 }
 0x367   :  { %v2582_v14 = vunpack.i.l.bf16 %v3499_v41  ;;  %1024 = vrot.lane.b32.xlu0 %v942_v32, %s2919_s0 }
 0x369   :  { %v842_v19 = vsel %vm165_vm3, %v2578_v36, %v2582_v14 }
 0x36a   :  { %v3517_v4 = vpop.permute.xlu1 %2590  ;;  %v951_v27 = vpack.c.bf16 %v842_v19, %v816_v23 }
 0x36c   :  { %1042 = vrot.lane.b32.xlu0 %v951_v27, %s2919_s0 }
 0x36e   :  { %v3528_v11 = vpop.permute.xlu1 %2600 }
 0x370   :  { %1054 = vrot.lane.b32.xlu0 %v957_v31, %s2919_s0  ;;  %v2552_v31 = vunpack.i.l.bf16 %v3456_v56 }
 0x372   :  { %v3536_v7 = vpop.permute.xlu1 %2610 }
 0x373   :  { %v2613_v12 = vunpack.i.h.bf16 %v3536_v7  ;;  %v2612_v15 = vunpack.i.l.bf16 %v3536_v7 }
 0x374   :  { %1018 = vrot.lane.b32.xlu0 %v939_v54, %s2919_s0 }
 0x375   :  { %v963_v1 = vpack.c.bf16 %v2612_v15, %v2612_v15  ;;  %v922_v39 = vsel %vm249_vm7, %v2612_v15, %v2613_v12  ;;  %v762_v15 = vpop.permute.xlu0 %761  ;;  %v923_v30 = vsel %vm249_vm7, %v2613_v12, %v3533_v22 }
 0x376   :  { %v735_v32 = vpop.permute.xlu1 %734  ;;  %v964_v23 = vpack.c.bf16 %v922_v39, %v922_v39  ;;  %v2618_v39 = vunpack.i.h.bf16 %v3545_v44  ;;  %v965_v63 = vpack.c.bf16 %v923_v30, %v923_v30 }
 0x377   :  { %v741_v19 = vsel %vm55_vm0, %v2608_v24, %v735_v32  ;;  %1066 = vrot.lane.b32.xlu1 %v963_v1, %s2919_s0  ;;  %v941_v27 = vpack.c.bf16 %v735_v32, %v3407_v17  ;;  %v2537_v24 = vunpack.i.l.bf16 %v3436_v52  ;;  %v766_v17 = vsel %vm83_vm2, %v2552_v31, %v4771_v29 }
 0x378   :  { %1068 = vrot.lane.b32.xlu0 %v964_v23, %s2919_s0  ;;  %v940_v21 = vpack.c.bf16 %v741_v19, %v3391_v42  ;;  %v2583_v32 = vunpack.i.h.bf16 %v3499_v41 }
 0x379   :  { %v3585_v25 = vpop.permute.xlu0 %2625 }
 0x37a   :  { %v3553_v10 = vpop.permute.xlu1 %2620  ;;  %v843_v52 = vsel %vm165_vm3, %v2582_v14, %v2583_v32  ;;  %v2627_v14 = vunpack.i.l.bf16 %v3585_v25 }
 0x37b   :  { %v4772_v54 = vunpack.i.l.bf16 %v3553_v10  ;;  %1022 = vrot.lane.b32.xlu1 %v941_v27, %s2919_s0  ;;  %v2623_v42 = vunpack.i.h.bf16 %v3553_v10  ;;  %v737_v27 = vsel %vm55_vm0, %v2537_v24, %v2538_v9  ;;  %v4830_v59 = vunpack.i.l.bf16 %v3553_v10 }
 0x37c   :  { %1020 = vrot.lane.b32.xlu0 %v940_v21, %s2919_s0  ;;  %v3577_v21 = vunpack.i.h.bf16 %v3440_v38  ;;  %v4832_v10 = vunpack.i.h.bf16 %v3493_v33 }
 0x37d   :  { %v793_v56 = vsel %vm111_vm1, %v2562_v37, %v4772_v54  ;;  %v936_v54 = vpack.c.bf16 %v737_v27, %v3368_v34  ;;  %v2603_v27 = vunpack.i.h.bf16 %v3528_v11  ;;  %v2641_v13 = vpop.permute.xlu0 %2640 }
 0x37e   :  { %v789_v40 = vpop.permute.xlu1 %788  ;;  %v945_v1 = vpack.c.bf16 %v793_v56, %v766_v17  ;;  %v4773_v17 = vunpack.i.h.bf16 %v3493_v33  ;;  %v768_v56 = vsel %vm83_vm2, %v2618_v39, %v762_v15 }
 0x37f   :  { %v795_v23 = vsel %vm111_vm1, %v2623_v42, %v789_v40  ;;  %v948_v19 = vpack.c.bf16 %v789_v40, %v762_v15  ;;  %v736_v15 = vsel %vm55_vm0, %v3577_v21, %v2537_v24  ;;  %v2602_v24 = vunpack.i.l.bf16 %v3528_v11  ;;  %v1285_v11 = vld [vmem:[%s4766_s5 + $0x8] sm:$0xff] }
 0x380   :  { %1030 = vrot.lane.b32.xlu0 %v945_v1, %s2919_s0  ;;  %v947_v40 = vpack.c.bf16 %v795_v23, %v768_v56  ;;  %v817_v23 = vsel %vm137_vm4, %v2572_v0, %v4773_v17  ;;  %v935_v0 = vpack.c.bf16 %v736_v15, %v2922_v51  ;;  %v792_v17 = vsel %vm111_vm1, %v2558_v26, %v2562_v37 }
 0x381   :  { %1036 = vrot.lane.b32.xlu1 %v948_v19, %s2919_s0  ;;  %v2628_v19 = vunpack.i.h.bf16 %v3585_v25  ;;  %v952_v34 = vpack.c.bf16 %v843_v52, %v817_v23  ;;  %v2592_v52 = vunpack.i.l.bf16 %v3517_v4  ;;  %v765_v51 = vsel %vm83_vm2, %v2548_v35, %v2552_v31 }
 0x382   :  { %v3587_v29 = vpop.permute.xlu1 %2630  ;;  %v897_v37 = vsel %vm221_vm5, %v2602_v24, %v2603_v27  ;;  %v2643_v31 = vunpack.i.h.bf16 %v2641_v13 }
 0x383   :  { %v2633_v9 = vunpack.i.h.bf16 %v3587_v29  ;;  %v2632_v1 = vunpack.i.l.bf16 %v3587_v29  ;;  %v819_v23 = vsel %vm137_vm4, %v2627_v14, %v2628_v19  ;;  %v869_v53 = vsel %vm193_vm6, %v2588_v46, %v2592_v52 }
 0x384   :  { %1034 = vrot.lane.b32.xlu0 %v947_v40, %s2919_s0  ;;  %v938_v46 = vpack.c.bf16 %v739_v57, %v3374_v28  ;;  %v4831_v28 = vunpack.i.l.bf16 %v3545_v44  ;;  %v900_v29 = vsel %vm221_vm5, %v2643_v31, %v3434_v49 }
 0x385   :  { %1012 = vrot.lane.b32.xlu1 %v936_v54, %s2919_s0  ;;  %v845_v40 = vsel %vm165_vm3, %v2632_v1, %v2633_v9  ;;  %v2593_v54 = vunpack.i.h.bf16 %v3517_v4  ;;  %v844_v12 = vsel %vm165_vm3, %v2583_v32, %v2632_v1  ;;  %v846_v44 = vsel %vm165_vm3, %v2633_v9, %v3430_v48 }
 0x386   :  { %v3606_v56 = vpop.permute.xlu1 %2635  ;;  %v954_v26 = vpack.c.bf16 %v845_v40, %v819_v23  ;;  %v2642_v40 = vunpack.i.l.bf16 %v2641_v13  ;;  %v955_v41 = vpack.c.bf16 %v846_v44, %v2628_v19 }
 0x387   :  { %v2638_v4 = vunpack.i.h.bf16 %v3606_v56  ;;  %v2637_v15 = vunpack.i.l.bf16 %v3606_v56  ;;  %v870_v35 = vsel %vm193_vm6, %v2592_v52, %v2593_v54  ;;  %v794_v52 = vsel %vm111_vm1, %v4830_v59, %v2623_v42 }
 0x388   :  { %1044 = vrot.lane.b32.xlu0 %v952_v34, %s2919_s0  ;;  %v944_v34 = vpack.c.bf16 %v792_v17, %v765_v51  ;;  %v815_v17 = vsel %vm137_vm4, %v2567_v55, %v2568_v2  ;;  %v959_v56 = vpack.c.bf16 %v897_v37, %v870_v35  ;;  %v899_v51 = vsel %vm221_vm5, %v2642_v40, %v2643_v31  ;;  %v2651_v55 = vpop.permute.xlu0 %2650 }
 0x389   :  { %1010 = vrot.lane.b32.xlu1 %v935_v0, %s2919_s0  ;;  %v841_v0 = vsel %vm165_vm3, %v2577_v58, %v2578_v36  ;;  %v872_v8 = vsel %vm193_vm6, %v2637_v15, %v2638_v4  ;;  %v896_v36 = vsel %vm221_vm5, %v2598_v45, %v2602_v24  ;;  %v2652_v45 = vunpack.i.l.bf16 %v2651_v55 }
 0x38a   :  { %v2646_v61 = vpop.permute.xlu1 %2645  ;;  %v950_v58 = vpack.c.bf16 %v841_v0, %v815_v17  ;;  %v961_v2 = vpack.c.bf16 %v899_v51, %v872_v8  ;;  %v818_v42 = vsel %vm137_vm4, %v4832_v10, %v2627_v14  ;;  %v898_v33 = vsel %vm221_vm5, %v2603_v27, %v2642_v40 }
 0x38b   :  { %v2647_v23 = vunpack.i.l.bf16 %v2646_v61  ;;  %v2648_v13 = vunpack.i.h.bf16 %v2646_v61  ;;  %v873_v1 = vsel %vm193_vm6, %v2638_v4, %v3432_v47  ;;  %v3716_v25 = vunpack.i.h.bf16 %v2651_v55 }
 0x38c   :  { %1048 = vrot.lane.b32.xlu0 %v954_v26, %s2919_s0  ;;  %v958_v26 = vpack.c.bf16 %v896_v36, %v869_v53  ;;  %v962_v9 = vpack.c.bf16 %v900_v29, %v873_v1  ;;  %v2923_v14 = vmov 2   ;;  %v2925_v0 = vmov 0.0|0.0  }
 0x38d   :  { %1028 = vrot.lane.b32.xlu1 %v944_v34, %s2919_s0  ;;  %v924_v37 = vsel %vm249_vm7, %v3533_v22, %v2647_v23  ;;  %v926_v24 = vsel %vm249_vm7, %v2648_v13, %v2652_v45  ;;  %v767_v22 = vsel %vm83_vm2, %v4831_v28, %v2618_v39  ;;  %v953_v34 = vpack.c.bf16 %v844_v12, %v818_v42 }
 0x38e   :  { %v966_v62 = vpack.c.bf16 %v924_v37, %v924_v37  ;;  %v968_v38 = vpack.c.bf16 %v926_v24, %v926_v24  ;;  %v946_v7 = vpack.c.bf16 %v794_v52, %v767_v22  ;;  %v871_v39 = vsel %vm193_vm6, %v2593_v54, %v2637_v15  ;;  %4833 = vst [vmem:[#allocation5_spill] sm:$0xff] %v3716_v25 }
 0x38f   :  { %v960_v32 = vpack.c.bf16 %v898_v33, %v871_v39  ;;  %v925_v19 = vsel %vm249_vm7, %v2647_v23, %v2648_v13  ;;  %2654 = vset.pattern.permute.xlu1 %v2923_v14  ;;  %2655 = vset.pattern.permute.xlu0 %v2923_v14  ;;  %v927_v54 = vsel %vm249_vm7, %v2652_v45, %v3716_v25  ;;  %v2924_v15 = vmov 3   ;;  %v2899_v39 = vld [vmem:[%s4767_s3] sm:$0xff]  }
 0x390   :  { %1058 = vrot.lane.b32.xlu0 %v959_v56, %s2919_s0  ;;  %v967_v27 = vpack.c.bf16 %v925_v19, %v925_v19  ;;  %v969_v4 = vpack.c.bf16 %v927_v54, %v927_v54 }
 0x391   :  { %1040 = vrot.lane.b32.xlu1 %v950_v58, %s2919_s0 }
 0x394   :  { %1062 = vrot.lane.b32.xlu0 %v961_v2, %s2919_s0 }
 0x395   :  { %1056 = vrot.lane.b32.xlu1 %v958_v26, %s2919_s0 }
 0x398   :  { %1072 = vrot.lane.b32.xlu0 %v966_v62, %s2919_s0 }
 0x399   :  { %1016 = vrot.lane.b32.xlu1 %v938_v46, %s2919_s0 }
 0x39c   :  { %1076 = vrot.lane.b32.xlu0 %v968_v38, %s2919_s0 }
 0x39d   :  { %1070 = vrot.lane.b32.xlu1 %v965_v63, %s2919_s0 }
 0x3a0   :  { %1381 = vperm.xlu0 %2655, %v1285_v11  }
 0x3a1   :  { %1032 = vrot.lane.b32.xlu1 %v946_v7, %s2919_s0 }
 0x3a5   :  { %1046 = vrot.lane.b32.xlu1 %v953_v34, %s2919_s0 }
 0x3a9   :  { %1050 = vrot.lane.b32.xlu1 %v955_v41, %s2919_s0 }
 0x3ad   :  { %1060 = vrot.lane.b32.xlu1 %v960_v32, %s2919_s0 }
 0x3b1   :  { %1064 = vrot.lane.b32.xlu1 %v962_v9, %s2919_s0 }
 0x3b5   :  { %1074 = vrot.lane.b32.xlu1 %v967_v27, %s2919_s0  ;;  %v4834_v27 = vmov 0  }
 0x3b9   :  { %1078 = vrot.lane.b32.xlu1 %v969_v4, %s2919_s0 }
 0x3bd   :  { %1376 = vperm.xlu1 %2654, %v3355_v50  }
 0x3c1   :  { %2656 = vset.pattern.permute.xlu1 %v2924_v15 }
 0x3c2   :  { %1397 = vperm.xlu1 %2656, %v3355_v50  }
 0x3c5   :  { %v1039_v56 = vpop.permute.xlu1 %1038 }
 0x3c6   :  { %1401 = vperm.xlu1 %2656, %v1285_v11  }
 0x3ca   :  { %1995 = vrot.lane.b32.xlu1 %v2925_v0, %s2919_s0 }
 0x3cd   :  { %v1053_v61 = vpop.permute.xlu0 %1052 }
 0x3d1   :  { %v1015_v35 = vpop.permute.xlu0 %1014 }
 0x3d5   :  { %v1027_v31 = vpop.permute.xlu0 %1026 }
 0x3d9   :  { %v1025_v40 = vpop.permute.xlu0 %1024 }
 0x3da   :  { %v1086_v62 = vsel %vm403_vm8, %v1025_v40, %v1027_v31 }
 0x3de   :  { %v3730_v17 = vpop.permute.xlu0 %1042 }
 0x3e2   :  { %v1055_v8 = vpop.permute.xlu0 %1054 }
 0x3e3   :  { %v1098_v52 = vsel %vm403_vm8, %v1053_v61, %v1055_v8 }
 0x3e6   :  { %v1019_v58 = vpop.permute.xlu0 %1018 }
 0x3e9   :  { %v1067_v23 = vpop.permute.xlu1 %1066 }
 0x3ea   :  { %v1069_v51 = vpop.permute.xlu0 %1068 }
 0x3eb   :  { %v1104_v10 = vsel %vm403_vm8, %v1067_v23, %v1069_v51 }
 0x3ec   :  { %v1138_v41 = vsel %vm462_vm9, %v1104_v10, 0 }
 0x3ed   :  { %v1023_v36 = vpop.permute.xlu1 %1022 }
 0x3ee   :  { %v1021_v2 = vpop.permute.xlu0 %1020 }
 0x3ef   :  { %v1085_v33 = vsel %vm403_vm8, %v1021_v2, %v1023_v36  ;;  %v1084_v9 = vsel %vm403_vm8, %v1019_v58, %v1021_v2 }
 0x3f2   :  { %v1031_v37 = vpop.permute.xlu0 %1030 }
 0x3f3   :  { %v1037_v53 = vpop.permute.xlu1 %1036 }
 0x3f6   :  { %v1035_v38 = vpop.permute.xlu0 %1034 }
 0x3f7   :  { %v1013_v55 = vpop.permute.xlu1 %1012  ;;  %v1091_v19 = vsel %vm403_vm8, %v1035_v38, %v1037_v53 }
 0x3f8   :  { %v1081_v50 = vsel %vm403_vm8, %v1013_v55, %v1015_v35 }
 0x3f9   :  { %1155 = vmatprep.subr.bf16.mxu1 %v1081_v50 }
 0x3fa   :  { %v1045_v28 = vpop.permute.xlu0 %1044 }
 0x3fb   :  { %v1011_v13 = vpop.permute.xlu1 %1010  ;;  %v1094_v4 = vsel %vm403_vm8, %v3730_v17, %v1045_v28 }
 0x3fc   :  { %v1080_v26 = vsel %vm403_vm8, %v1011_v13, %v1013_v55 }
 0x3fd   :  { %1156 = vmatpush1.bf16.msra.mxu1 %v1080_v26 }
 0x3fe   :  { %v1049_v44 = vpop.permute.xlu0 %1048 }
 0x3ff   :  { %v1029_v57 = vpop.permute.xlu1 %1028 }
 0x400   :  { %v1087_v45 = vsel %vm403_vm8, %v1027_v31, %v1029_v57  ;;  %v1088_v29 = vsel %vm403_vm8, %v1029_v57, %v1031_v37 }
 0x401   :  { %1157 = vmatprep.subr.bf16.mxu1 %v1087_v45 }
 0x402   :  { %1158 = vmatpush1.bf16.msra.mxu1 %v1086_v62  ;;  %v1059_v14 = vpop.permute.xlu0 %1058 }
 0x403   :  { %v1041_v46 = vpop.permute.xlu1 %1040 }
 0x404   :  { %v1093_v24 = vsel %vm403_vm8, %v1041_v46, %v3730_v17  ;;  %v1092_v30 = vsel %vm403_vm8, %v1039_v56, %v1041_v46 }
 0x405   :  { %1159 = vmatprep.subr.bf16.mxu1 %v1093_v24 }
 0x406   :  { %1160 = vmatpush1.bf16.msra.mxu1 %v1092_v30 }
 0x407   :  { %v1057_v63 = vpop.permute.xlu1 %1056 }
 0x408   :  { %v1099_v59 = vsel %vm403_vm8, %v1055_v8, %v1057_v63  ;;  %v1100_v8 = vsel %vm403_vm8, %v1057_v63, %v1059_v14 }
 0x409   :  { %1161 = vmatprep.subr.bf16.mxu1 %v1099_v59 }
 0x40a   :  { %1162 = vmatpush1.bf16.msra.mxu1 %v1098_v52 }
 0x40b   :  { %v1017_v22 = vpop.permute.xlu1 %1016 }
 0x40c   :  { %v1083_v7 = vsel %vm403_vm8, %v1017_v22, %v1019_v58  ;;  %v1082_v12 = vsel %vm403_vm8, %v1015_v35, %v1017_v22  ;;  %v1063_v35 = vpop.permute.xlu0 %1062 }
 0x40d   :  { %1198 = vmatprep.subr.bf16.mxu0 %v1083_v7 }
 0x40e   :  { %1199 = vmatpush1.bf16.msra.mxu0 %v1082_v12 }
 0x40f   :  { %v1071_v42 = vpop.permute.xlu1 %1070 }
 0x410   :  { %v1105_v34 = vsel %vm403_vm8, %v1069_v51, %v1071_v42  ;;  %v1073_v17 = vpop.permute.xlu0 %1072 }
 0x411   :  { %2385 = vmatprep.subr.msk.bf16.mxu1 %vm462_vm9, %v1105_v34  ;;  %v1106_v51 = vsel %vm403_vm8, %v1071_v42, %v1073_v17 }
 0x412   :  { %1164 = vmatpush1.bf16.msra.mxu1 %v1138_v41  ;;  %v1144_v2 = vsel %vm462_vm9, %v1106_v51, 0 }
 0x413   :  { %1241 = vmatprep.subr.bf16.mxu1 %v1085_v33  ;;  %v1033_v32 = vpop.permute.xlu1 %1032 }
 0x414   :  { %v1089_v1 = vsel %vm403_vm8, %v1031_v37, %v1033_v32  ;;  %v1090_v15 = vsel %vm403_vm8, %v1033_v32, %v1035_v38  ;;  %v1077_v50 = vpop.permute.xlu0 %1076 }
 0x415   :  { %1200 = vmatprep.subr.bf16.mxu0 %v1089_v1  ;;  %2386 = vmatmul.mubr.msk.bf16.vlgmr.msra.gmra.mrb[8].mxu1 %vm458_vm10, %v2899_v39 }
 0x416   :  { %1201 = vmatpush1.bf16.msra.mxu0 %v1088_v29  ;;  %1242 = vmatpush1.bf16.msra.mxu1 %v1084_v9 }
 0x417   :  { %1243 = vmatprep.subr.bf16.mxu1 %v1091_v19  ;;  %v1047_v11 = vpop.permute.xlu1 %1046  ;;  %1273 = vmatprep.mubr.bf16.mxu1 %v4834_v27 }
 0x418   :  { %v1095_v54 = vsel %vm403_vm8, %v1045_v28, %v1047_v11  ;;  %v1096_v31 = vsel %vm403_vm8, %v1047_v11, %v1049_v44 }
 0x419   :  { %1202 = vmatprep.subr.bf16.mxu0 %v1095_v54 }
 0x41a   :  { %1203 = vmatpush1.bf16.msra.mxu0 %v1094_v4  ;;  %1244 = vmatpush1.bf16.msra.mxu1 %v1090_v15 }
 0x41b   :  { %v1051_v0 = vpop.permute.xlu1 %1050 }
 0x41c   :  { %v1097_v61 = vsel %vm403_vm8, %v1049_v44, %v1051_v0 }
 0x41d   :  { %1245 = vmatprep.subr.bf16.mxu1 %v1097_v61 }
 0x41e   :  { %1246 = vmatpush1.bf16.msra.mxu1 %v1096_v31 }
 0x41f   :  { %v1061_v40 = vpop.permute.xlu1 %1060 }
 0x420   :  { %v1101_v56 = vsel %vm403_vm8, %v1059_v14, %v1061_v40  ;;  %v1102_v36 = vsel %vm403_vm8, %v1061_v40, %v1063_v35 }
 0x421   :  { %1204 = vmatprep.subr.bf16.mxu0 %v1101_v56 }
 0x422   :  { %1205 = vmatpush1.bf16.msra.mxu0 %v1100_v8 }
 0x423   :  { %v1065_v23 = vpop.permute.xlu1 %1064 }
 0x424   :  { %v1103_v58 = vsel %vm403_vm8, %v1063_v35, %v1065_v23 }
 0x425   :  { %1247 = vmatprep.subr.bf16.mxu1 %v1103_v58 }
 0x426   :  { %1248 = vmatpush1.bf16.msra.mxu1 %v1102_v36 }
 0x427   :  { %v1075_v53 = vpop.permute.xlu1 %1074 }
 0x428   :  { %v1107_v55 = vsel %vm403_vm8, %v1073_v17, %v1075_v53  ;;  %v1108_v13 = vsel %vm403_vm8, %v1075_v53, %v1077_v50 }
 0x429   :  { %2387 = vmatprep.subr.msk.bf16.mxu0 %vm462_vm9, %v1107_v55  ;;  %v1150_v57 = vsel %vm462_vm9, %v1108_v13, 0 }
 0x42a   :  { %1207 = vmatpush1.bf16.msra.mxu0 %v1144_v2 }
 0x42b   :  { %v1079_v26 = vpop.permute.xlu1 %1078 }
 0x42c   :  { %v1109_v37 = vsel %vm403_vm8, %v1077_v50, %v1079_v26 }
 0x42d   :  { %2388 = vmatmul.mubr.msk.bf16.vlgmr.msra.gmra.mrb[4].mxu0 %vm458_vm10, %v2899_v39  ;;  %2389 = vmatprep.subr.msk.bf16.mxu1 %vm462_vm9, %v1109_v37 }
 0x42e   :  { %1250 = vmatpush1.bf16.msra.mxu1 %v1150_v57 }
 0x431   :  { %2390 = vmatmul.mubr.msk.bf16.vlgmr.msra.gmra.mrb[12].mxu1 %vm458_vm10, %v2899_v39 }
 0x4e8   :  { %v3777_v45 = vpop.f32.mrb[8].mxu1 }
 0x4e9   :  { %v1286_v62 = vmul.f32 %v3777_v45, %v3322_v3  ;;  %v3781_v46 = vpop.f32.mrb[9].mxu1 }
 0x4ea   :  { %v1287_v24 = vmul.f32 %v3781_v46, %v3324_v5  ;;  %v3785_v30 = vpop.f32.mrb[10].mxu1 }
 0x4eb   :  { %v1314_v38 = vmul.f32 %v1286_v62, %v3777_v45  ;;  %v1292_v63 = vmul.f32 %v3785_v30, %v3322_v3  ;;  %v3790_v59 = vpop.f32.mrb[11].mxu1 }
 0x4ec   :  { %v1298_v52 = vadd.f32 %v1287_v24, %v1286_v62  ;;  %v1315_v28 = vmul.f32 %v1287_v24, %v3781_v46  ;;  %v1293_v22 = vmul.f32 %v3790_v59, %v3324_v5 }
 0x4ed   :  { %v1320_v7 = vmul.f32 %v1292_v63, %v3785_v30 }
 0x4ee   :  { %v1326_v12 = vadd.f32 %v1315_v28, %v1314_v38  ;;  %v1305_v10 = vadd.f32 %v1293_v22, %v1292_v63  ;;  %v1321_v42 = vmul.f32 %v1293_v22, %v3790_v59  ;;  %v3837_v28 = vpop.permute.xlu1 %1376 }
 0x4f0   :  { %v1333_v34 = vadd.f32 %v1321_v42, %v1320_v7 }
 0x4f2   :  { %v3839_v22 = vpop.permute.xlu1 %1397 }
 0x4f6   :  { %v3841_v7 = vpop.permute.xlu1 %1401 }
 0x500   :  { %v3797_v44 = vpop.f32.mrb[4].mxu0 }
 0x501   :  { %v1288_v41 = vmul.f32 %v3797_v44, %v3336_v60  ;;  %v3801_v39 = vpop.f32.mrb[5].mxu0 }
 0x502   :  { %v1289_v33 = vmul.f32 %v3801_v39, %v3338_v43  ;;  %v3805_v32 = vpop.f32.mrb[6].mxu0 }
 0x503   :  { %v1299_v1 = vadd.f32 %v1298_v52, %v1288_v41  ;;  %v1316_v29 = vmul.f32 %v1288_v41, %v3797_v44  ;;  %v1294_v9 = vmul.f32 %v3805_v32, %v3336_v60  ;;  %v3810_v19 = vpop.f32.mrb[7].mxu0 }
 0x504   :  { %v1317_v14 = vmul.f32 %v1289_v33, %v3801_v39  ;;  %v1295_v11 = vmul.f32 %v3810_v19, %v3338_v43  ;;  %v3815_v27 = vpop.f32.mrb[12].mxu1 }
 0x505   :  { %v1327_v54 = vadd.f32 %v1326_v12, %v1316_v29  ;;  %v1300_v4 = vadd.f32 %v1299_v1, %v1289_v33  ;;  %v1306_v15 = vadd.f32 %v1305_v10, %v1294_v9  ;;  %v1322_v0 = vmul.f32 %v1294_v9, %v3805_v32  ;;  %v3818_v61 = vpop.f32.mrb[13].mxu1  ;;  %v3843_v12 = vpop.permute.xlu0 %1381 }
 0x506   :  { %v1323_v35 = vmul.f32 %v1295_v11, %v3810_v19  ;;  %v1290_v31 = vmul.f32 %v3815_v27, %v3341_v18  ;;  %v1291_v40 = vmul.f32 %v3818_v61, %v3344_v16  ;;  %v3825_v56 = vpop.f32.mrb[14].mxu1  ;;  %v3845_v10 = vpop.permute.xlu1 %1995 }
 0x507   :  { %v1328_v8 = vadd.f32 %v1327_v54, %v1317_v14  ;;  %v1334_v17 = vadd.f32 %v1333_v34, %v1322_v0  ;;  %v1307_v23 = vadd.f32 %v1306_v15, %v1295_v11  ;;  %v1296_v58 = vmul.f32 %v3825_v56, %v3341_v18  ;;  %v3829_v36 = vpop.f32.mrb[15].mxu1 }
 0x508   :  { %v1301_v51 = vadd.f32 %v1300_v4, %v1290_v31  ;;  %v1318_v53 = vmul.f32 %v1290_v31, %v3815_v27  ;;  %v1319_v55 = vmul.f32 %v1291_v40, %v3818_v61  ;;  %v1297_v50 = vmul.f32 %v3829_v36, %v3344_v16 }
 0x509   :  { %v1335_v2 = vadd.f32 %v1334_v17, %v1323_v35  ;;  %v1308_v13 = vadd.f32 %v1307_v23, %v1296_v58  ;;  %v1324_v26 = vmul.f32 %v1296_v58, %v3825_v56 }
 0x50a   :  { %v1329_v37 = vadd.f32 %v1328_v8, %v1318_v53  ;;  %v1325_v57 = vmul.f32 %v1297_v50, %v3829_v36  ;;  %v1302_v62 = vadd.f32 %v1301_v51, %v1291_v40 }
 0x50b   :  { %v1336_v24 = vadd.f32 %v1335_v2, %v1324_v26  ;;  %v1309_v38 = vadd.f32 %v1308_v13, %v1297_v50 }
 0x50c   :  { %1303 = vadd.xlane.f32.xlu0 %v1302_v62  ;;  %v1330_v63 = vadd.f32 %v1329_v37, %v1319_v55 }
 0x50d   :  { %1310 = vadd.xlane.f32.xlu1 %v1309_v38  ;;  %v1337_v52 = vadd.f32 %v1336_v24, %v1325_v57 }
 0x510   :  { %1331 = vadd.xlane.f32.xlu0 %v1330_v63 }
 0x514   :  { %1338 = vadd.xlane.f32.xlu0 %v1337_v52 }
 0x599   :  { %v1304_v42 = vpop.xlane.xlu0 %1303 }
 0x59a   :  { %v1312_v34 = vmul.f32 0.001953125, %v1304_v42  ;;  %v1311_v41 = vpop.xlane.xlu1 %1310 }
 0x59b   :  { %v3848_v29 = vmul.f32 0.001953125, %v1311_v41 }
 0x59c   :  { %v1351_v33 = vsub.f32 %v3818_v61, %v1312_v34  ;;  %v1342_v9 = vmul.f32 %v1312_v34, %v1312_v34  ;;  %v1346_v40 = vsub.f32 %v3777_v45, %v1312_v34  ;;  %v1347_v61 = vsub.f32 %v3781_v46, %v1312_v34 }
 0x59d   :  { %v1332_v1 = vpop.xlane.xlu0 %1331  ;;  %v1343_v15 = vmul.f32 %v3848_v29, %v3848_v29  ;;  %v1348_v8 = vsub.f32 %v3797_v44, %v1312_v34  ;;  %v1349_v17 = vsub.f32 %v3801_v39, %v1312_v34  ;;  %v1350_v23 = vsub.f32 %v3815_v27, %v1312_v34 }
 0x59e   :  { %v1340_v14 = vmul.f32 0.001953125, %v1332_v1  ;;  %v1352_v51 = vsub.f32 %v3785_v30, %v3848_v29  ;;  %v1353_v53 = vsub.f32 %v3790_v59, %v3848_v29  ;;  %v1354_v55 = vsub.f32 %v3805_v32, %v3848_v29 }
 0x59f   :  { %v1355_v45 = vsub.f32 %v3810_v19, %v3848_v29  ;;  %v1356_v39 = vsub.f32 %v3825_v56, %v3848_v29  ;;  %v1357_v27 = vsub.f32 %v3829_v36, %v3848_v29 }
 0x5a0   :  { %v1344_v11 = vsub.f32 %v1340_v14, %v1342_v9 }
 0x5a1   :  { %v1339_v54 = vpop.xlane.xlu0 %1338 }
 0x5a2   :  { %v1341_v4 = vmul.f32 0.001953125, %v1339_v54  ;;  %v1358_v0 = vadd.f32 1e-05, %v1344_v11 }
 0x5a4   :  { %v1345_v35 = vsub.f32 %v1341_v4, %v1343_v15  ;;  %2905 = vrsqrt.f32 %v1358_v0 }
 0x5a6   :  { %v1359_v31 = vadd.f32 1e-05, %v1345_v35 }
 0x5a8   :  { %2907 = vrsqrt.f32 %v1359_v31 }
 0x5ae   :  { %v2906_v58 = vpop.eup %2905 }
 0x5af   :  { %v1362_v46 = vmul.f32 %v2906_v58, %v1346_v40  ;;  %v1363_v50 = vmul.f32 %v2906_v58, %v1347_v61  ;;  %v1365_v44 = vmul.f32 %v2906_v58, %v1349_v17  ;;  %v1366_v2 = vmul.f32 %v2906_v58, %v1350_v23 }
 0x5b0   :  { %v1364_v30 = vmul.f32 %v2906_v58, %v1348_v8  ;;  %v1367_v13 = vmul.f32 %v2906_v58, %v1351_v33 }
 0x5b1   :  { %v1384_v59 = vmul.f32 %v3837_v28, %v1362_v46  ;;  %v1385_v32 = vmul.f32 %v3837_v28, %v1363_v50  ;;  %v1387_v37 = vmul.f32 %v3837_v28, %v1365_v44  ;;  %v1388_v19 = vmul.f32 %v3837_v28, %v1366_v2 }
 0x5b2   :  { %v2908_v26 = vpop.eup %2907  ;;  %v1386_v38 = vmul.f32 %v3837_v28, %v1364_v30 }
 0x5b3   :  { %v1369_v57 = vmul.f32 %v2908_v26, %v1353_v53  ;;  %v1370_v62 = vmul.f32 %v2908_v26, %v1354_v55  ;;  %v1368_v24 = vmul.f32 %v2908_v26, %v1352_v51  ;;  %v1404_v56 = vadd.f32 %v3839_v22, %v1384_v59 }
 0x5b4   :  { %v1405_v36 = vadd.f32 %v3839_v22, %v1385_v32  ;;  %v1407_v63 = vadd.f32 %v3839_v22, %v1387_v37  ;;  %v1408_v52 = vadd.f32 %v3839_v22, %v1388_v19  ;;  %v1406_v33 = vadd.f32 %v3839_v22, %v1386_v38 }
 0x5b5   :  { %v1391_v42 = vmul.f32 %v3843_v12, %v1369_v57  ;;  %v1392_v34 = vmul.f32 %v3843_v12, %v1370_v62  ;;  %v1390_v41 = vmul.f32 %v3843_v12, %v1368_v24  ;;  %v1416_v1 = vmax.f32 %v1404_v56, 0.0 }
 0x5b6   :  { %v1417_v29 = vmax.f32 %v1405_v36, 0.0  ;;  %v1419_v9 = vmax.f32 %v1407_v63, 0.0  ;;  %v1420_v14 = vmax.f32 %v1408_v52, 0.0  ;;  %v1418_v15 = vmax.f32 %v1406_v33, 0.0 }
 0x5b7   :  { %v1411_v11 = vadd.f32 %v3841_v7, %v1391_v42  ;;  %v1412_v54 = vadd.f32 %v3841_v7, %v1392_v34  ;;  %v1410_v4 = vadd.f32 %v3841_v7, %v1390_v41  ;;  %v3886_v0 = vmul.f32 %v1416_v1, %v3322_v3 }
 0x5b8   :  { %v3889_v35 = vmul.f32 %v1417_v29, %v3324_v5  ;;  %v3892_v31 = vmul.f32 %v1419_v9, %v3338_v43  ;;  %v3895_v40 = vmul.f32 %v1420_v14, %v3341_v18  ;;  %v3898_v23 = vmul.f32 %v1418_v15, %v3336_v60 }
 0x5b9   :  { %v1423_v61 = vmax.f32 %v1411_v11, 0.0  ;;  %v1424_v8 = vmax.f32 %v1412_v54, 0.0  ;;  %v1422_v17 = vmax.f32 %v1410_v4, 0.0  ;;  %v1371_v53 = vmul.f32 %v2908_v26, %v1355_v45 }
 0x5ba   :  { %v2672_v58 = vpack.i.bf16 %v3889_v35, %v3886_v0  ;;  %v2702_v51 = vpack.i.bf16 %v3895_v40, %v3892_v31  ;;  %v1389_v55 = vmul.f32 %v3837_v28, %v1367_v13  ;;  %v1372_v2 = vmul.f32 %v2908_v26, %v1356_v39 }
 0x5bb   :  { %v3906_v46 = vmul.f32 %v1423_v61, %v3324_v5  ;;  %v3909_v50 = vmul.f32 %v1424_v8, %v3336_v60  ;;  %v3912_v44 = vmul.f32 %v1422_v17, %v3322_v3  ;;  %v1393_v30 = vmul.f32 %v3843_v12, %v1371_v53 }
 0x5bc   :  { %2673 = vrot.lane.b32.xlu0 %v2672_v58, %s2914_s10  ;;  %2658 = vrot.lane.b32.xlu1 %v2672_v58, %s2912_s30  ;;  %v1409_v45 = vadd.f32 %v3839_v22, %v1389_v55  ;;  %v1373_v59 = vmul.f32 %v2908_v26, %v1357_v27  ;;  %v1394_v39 = vmul.f32 %v3843_v12, %v1372_v2 }
 0x5bd   :  { %v2752_v5 = vpack.i.bf16 %v3909_v50, %v3906_v46  ;;  %v2737_v60 = vpack.i.bf16 %v3912_v44, %v3898_v23  ;;  %v1413_v28 = vadd.f32 %v3841_v7, %v1393_v30  ;;  %v1854_v22 = vpack.c.bf16 %v3906_v46, %v3889_v35 }
 0x5be   :  { %v1421_v3 = vmax.f32 %v1409_v45, 0.0  ;;  %v1395_v13 = vmul.f32 %v3843_v12, %v1373_v59  ;;  %v1855_v27 = vpack.c.bf16 %v3909_v50, %v3898_v23  ;;  %v1414_v32 = vadd.f32 %v3841_v7, %v1394_v39 }
 0x5bf   :  { %v1425_v26 = vmax.f32 %v1413_v28, 0.0  ;;  %v1853_v37 = vpack.c.bf16 %v3912_v44, %v3886_v0 }
 0x5c0   :  { %2683 = vrot.lane.b32.xlu0 %v2672_v58, %s2916_s12  ;;  %2663 = vrot.lane.b32.xlu1 %v2672_v58, %s2911_s29  ;;  %v1415_v19 = vadd.f32 %v3841_v7, %v1395_v13  ;;  %v1433_v57 = vmul.f32 %v1421_v3, %v3344_v16  ;;  %v1426_v24 = vmax.f32 %v1414_v32, 0.0 }
 0x5c1   :  { %v1437_v62 = vmul.f32 %v1425_v26, %v3338_v43 }
 0x5c2   :  { %v1427_v12 = vmax.f32 %v1415_v19, 0.0  ;;  %v1438_v56 = vmul.f32 %v1426_v24, %v3341_v18 }
 0x5c3   :  { %v2817_v38 = vpack.i.bf16 %v1437_v62, %v1433_v57  ;;  %v1856_v36 = vpack.c.bf16 %v1437_v62, %v3892_v31 }
 0x5c4   :  { %2693 = vrot.lane.b32.xlu0 %v2672_v58, %s2918_s16  ;;  %2668 = vrot.lane.b32.xlu1 %v2672_v58, %s2913_s9  ;;  %v1439_v63 = vmul.f32 %v1427_v12, %v3344_v16  ;;  %v1857_v52 = vpack.c.bf16 %v1438_v56, %v3895_v40 }
 0x5c6   :  { %v2832_v43 = vpack.i.bf16 %v1439_v63, %v1438_v56  ;;  %v1858_v7 = vpack.c.bf16 %v1439_v63, %v1433_v57 }
 0x5c8   :  { %2703 = vrot.lane.b32.xlu0 %v2702_v51, %s2911_s29  ;;  %2678 = vrot.lane.b32.xlu1 %v2672_v58, %s2915_s11 }
 0x5cc   :  { %2713 = vrot.lane.b32.xlu0 %v2702_v51, %s2914_s10  ;;  %2688 = vrot.lane.b32.xlu1 %v2672_v58, %s2917_s13 }
 0x5d0   :  { %2723 = vrot.lane.b32.xlu0 %v2702_v51, %s2916_s12  ;;  %2698 = vrot.lane.b32.xlu1 %v2702_v51, %s2912_s30 }
 0x5d4   :  { %2728 = vrot.lane.b32.xlu0 %v2702_v51, %s2917_s13  ;;  %2708 = vrot.lane.b32.xlu1 %v2702_v51, %s2913_s9 }
 0x5d8   :  { %2733 = vrot.lane.b32.xlu0 %v2702_v51, %s2918_s16  ;;  %2718 = vrot.lane.b32.xlu1 %v2702_v51, %s2915_s11 }
 0x5dc   :  { %2753 = vrot.lane.b32.xlu0 %v2752_v5, %s2911_s29  ;;  %2738 = vrot.lane.b32.xlu1 %v2737_v60, %s2912_s30 }
 0x5e0   :  { %2758 = vrot.lane.b32.xlu0 %v2737_v60, %s2913_s9  ;;  %2743 = vrot.lane.b32.xlu1 %v2752_v5, %s2912_s30 }
 0x5e4   :  { %2773 = vrot.lane.b32.xlu0 %v2752_v5, %s2914_s10  ;;  %2748 = vrot.lane.b32.xlu1 %v2737_v60, %s2911_s29 }
 0x5e8   :  { %2778 = vrot.lane.b32.xlu0 %v2737_v60, %s2915_s11  ;;  %2763 = vrot.lane.b32.xlu1 %v2752_v5, %s2913_s9 }
 0x5ec   :  { %2793 = vrot.lane.b32.xlu0 %v2752_v5, %s2916_s12  ;;  %2768 = vrot.lane.b32.xlu1 %v2737_v60, %s2914_s10 }
 0x5f0   :  { %2798 = vrot.lane.b32.xlu0 %v2737_v60, %s2917_s13  ;;  %2783 = vrot.lane.b32.xlu1 %v2752_v5, %s2915_s11 }
 0x5f4   :  { %2813 = vrot.lane.b32.xlu0 %v2752_v5, %s2918_s16  ;;  %2788 = vrot.lane.b32.xlu1 %v2737_v60, %s2916_s12 }
 0x5f8   :  { %2818 = vrot.lane.b32.xlu0 %v2817_v38, %s2912_s30  ;;  %2803 = vrot.lane.b32.xlu1 %v2752_v5, %s2917_s13 }
 0x5fc   :  { %2833 = vrot.lane.b32.xlu0 %v2832_v43, %s2911_s29  ;;  %2808 = vrot.lane.b32.xlu1 %v2737_v60, %s2918_s16 }
 0x600   :  { %2838 = vrot.lane.b32.xlu0 %v2817_v38, %s2913_s9  ;;  %2823 = vrot.lane.b32.xlu1 %v2832_v43, %s2912_s30 }
 0x604   :  { %2853 = vrot.lane.b32.xlu0 %v2832_v43, %s2914_s10  ;;  %2828 = vrot.lane.b32.xlu1 %v2817_v38, %s2911_s29 }
 0x608   :  { %2858 = vrot.lane.b32.xlu0 %v2817_v38, %s2915_s11  ;;  %2843 = vrot.lane.b32.xlu1 %v2832_v43, %s2913_s9 }
 0x60c   :  { %2873 = vrot.lane.b32.xlu0 %v2832_v43, %s2916_s12  ;;  %2848 = vrot.lane.b32.xlu1 %v2817_v38, %s2914_s10 }
 0x610   :  { %2883 = vrot.lane.b32.xlu0 %v2832_v43, %s2917_s13  ;;  %2863 = vrot.lane.b32.xlu1 %v2832_v43, %s2915_s11 }
 0x614   :  { %2893 = vrot.lane.b32.xlu0 %v2832_v43, %s2918_s16  ;;  %2868 = vrot.lane.b32.xlu1 %v2817_v38, %s2916_s12 }
 0x618   :  { %1999 = vrot.lane.b32.xlu0 %v1854_v22, %s2919_s0  ;;  %2878 = vrot.lane.b32.xlu1 %v2817_v38, %s2917_s13 }
 0x61c   :  { %2001 = vrot.lane.b32.xlu0 %v1855_v27, %s2919_s0  ;;  %2888 = vrot.lane.b32.xlu1 %v2817_v38, %s2918_s16 }
 0x620   :  { %2005 = vrot.lane.b32.xlu0 %v1857_v52, %s2919_s0  ;;  %1997 = vrot.lane.b32.xlu1 %v1853_v37, %s2919_s0 }
 0x624   :  { %2003 = vrot.lane.b32.xlu1 %v1856_v36, %s2919_s0 }
 0x628   :  { %2007 = vrot.lane.b32.xlu1 %v1858_v7, %s2919_s0 }
 0x62e   :  { %v3991_v18 = vpop.permute.xlu0 %2673  ;;  %v3993_v16 = vpop.permute.xlu1 %2658 }
 0x62f   :  { %v4776_v2 = vunpack.i.l.bf16 %v3991_v18  ;;  %v4790_v37 = vunpack.i.h.bf16 %v3993_v16  ;;  %v4839_v49 = vunpack.i.h.bf16 %v3993_v16 }
 0x632   :  { %v3995_v42 = vpop.permute.xlu0 %2683  ;;  %v3997_v34 = vpop.permute.xlu1 %2663 }
 0x633   :  { %v4777_v12 = vunpack.i.l.bf16 %v3995_v42  ;;  %v4782_v38 = vunpack.i.h.bf16 %v3997_v34 }
 0x636   :  { %v3999_v41 = vpop.permute.xlu0 %2693  ;;  %v4001_v33 = vpop.permute.xlu1 %2668 }
 0x637   :  { %v4841_v48 = vunpack.i.h.bf16 %v3999_v41 }
 0x63a   :  { %v4003_v1 = vpop.permute.xlu0 %2703  ;;  %v4005_v29 = vpop.permute.xlu1 %2678 }
 0x63b   :  { %v2680_v53 = vunpack.i.l.bf16 %v4005_v29 }
 0x63e   :  { %v4007_v9 = vpop.permute.xlu0 %2713  ;;  %v4009_v14 = vpop.permute.xlu1 %2688 }
 0x63f   :  { %v4800_v3 = vunpack.i.l.bf16 %v4009_v14 }
 0x642   :  { %v4011_v11 = vpop.permute.xlu0 %2723  ;;  %v4013_v54 = vpop.permute.xlu1 %2698 }
 0x646   :  { %v4015_v4 = vpop.permute.xlu0 %2728  ;;  %v4017_v15 = vpop.permute.xlu1 %2708 }
 0x647   :  { %v4774_v39 = vunpack.i.l.bf16 %v4015_v4 }
 0x64a   :  { %v4019_v0 = vpop.permute.xlu0 %2733  ;;  %v4021_v35 = vpop.permute.xlu1 %2718 }
 0x64b   :  { %4835 = vst [vmem:[#allocation6_spill] sm:$0xff] %v4019_v0 }
 0x64e   :  { %v4023_v31 = vpop.permute.xlu0 %2753  ;;  %v4025_v40 = vpop.permute.xlu1 %2738 }
 0x64f   :  { %v4784_v27 = vunpack.i.l.bf16 %v4025_v40  ;;  %v4781_v56 = vunpack.i.h.bf16 %v4023_v31  ;;  %v4785_v36 = vunpack.i.l.bf16 %v4023_v31 }
 0x651   :  { %v1480_v63 = vsel %vm55_vm0, %v4790_v37, %v4784_v27 }
 0x652   :  { %v4027_v61 = vpop.permute.xlu0 %2758  ;;  %v4029_v8 = vpop.permute.xlu1 %2743 }
 0x653   :  { %v4787_v45 = vunpack.i.h.bf16 %v4029_v8  ;;  %v4802_v59 = vunpack.i.l.bf16 %v4029_v8  ;;  %v4836_v25 = vunpack.i.l.bf16 %v4029_v8 }
 0x655   :  { %v1486_v19 = vsel %vm55_vm0, %v4802_v59, %v4787_v45 }
 0x656   :  { %v4031_v17 = vpop.permute.xlu0 %2773  ;;  %v4033_v23 = vpop.permute.xlu1 %2748  ;;  %v1861_v43 = vpack.c.bf16 %v1486_v19, %v1480_v63  ;;  %v4786_v19 = vunpack.i.h.bf16 %v4001_v33  ;;  %v2670_v63 = vunpack.i.l.bf16 %v4001_v33 }
 0x657   :  { %v4780_v57 = vunpack.i.l.bf16 %v4033_v23 }
 0x659   :  { %v1530_v7 = vsel %vm83_vm2, %v4782_v38, %v4780_v57  ;;  %v4788_v57 = vunpack.i.l.bf16 %v3999_v41 }
 0x65a   :  { %v4035_v58 = vpop.permute.xlu0 %2778  ;;  %v4037_v51 = vpop.permute.xlu1 %2763 }
 0x65b   :  { %v2781_v55 = vunpack.i.h.bf16 %v4035_v58 }
 0x65d   :  { %v1887_v46 = vpack.c.bf16 %v2781_v55, %v2680_v53 }
 0x65e   :  { %v4045_v50 = vpop.permute.xlu0 %2793  ;;  %v4047_v44 = vpop.permute.xlu1 %2768 }
 0x65f   :  { %2065 = vrot.lane.b32.xlu0 %v1887_v46, %s2919_s0  ;;  %v4779_v30 = vunpack.i.h.bf16 %v4047_v44  ;;  %v4783_v46 = vunpack.i.l.bf16 %v4037_v51 }
 0x661   :  { %v1880_v5 = vpack.c.bf16 %v4779_v30, %v4776_v2  ;;  %v2761_v2 = vunpack.i.h.bf16 %v4027_v61 }
 0x662   :  { %v4058_v60 = vpop.permute.xlu0 %2798  ;;  %v4060_v28 = vpop.permute.xlu1 %2783 }
 0x663   :  { %v2801_v13 = vunpack.i.h.bf16 %v4058_v60  ;;  %v4775_v22 = vunpack.i.l.bf16 %v4058_v60  ;;  %2051 = vrot.lane.b32.xlu1 %v1880_v5, %s2919_s0 }
 0x665   :  { %v4073_v26 = vsel %vm221_vm5, %v4775_v22, %v4774_v39  ;;  %v1901_v32 = vpack.c.bf16 %v2801_v13, %v4800_v3  ;;  %v1536_v22 = vsel %vm83_vm2, %v4785_v36, %v4781_v56  ;;  %v1579_v56 = vsel %vm111_vm1, %v2670_v63, %v4786_v19 }
 0x666   :  { %v4086_v62 = vpop.permute.xlu0 %2813  ;;  %v4088_v24 = vpop.permute.xlu1 %2788  ;;  %v4792_v36 = vunpack.i.h.bf16 %v3991_v18  ;;  %v1578_v19 = vsel %vm111_vm1, %v3482_v6, %v2670_v63 }
 0x667   :  { %2093 = vrot.lane.b32.xlu0 %v1901_v32, %s2919_s0  ;;  %v4778_v52 = vunpack.i.h.bf16 %v4088_v24 }
 0x669   :  { %v1894_v5 = vpack.c.bf16 %v4778_v52, %v4777_v12  ;;  %v1868_v12 = vpack.c.bf16 %v1536_v22, %v1530_v7  ;;  %v1585_v52 = vsel %vm111_vm1, %v2761_v2, %v4783_v46  ;;  %v1584_v22 = vsel %vm111_vm1, %v3482_v6, %v2761_v2 }
 0x66a   :  { %v4111_v32 = vpop.permute.xlu0 %2818  ;;  %v4113_v39 = vpop.permute.xlu1 %2803  ;;  %v4791_v7 = vunpack.i.l.bf16 %v4047_v44  ;;  %v4794_v2 = vunpack.i.h.bf16 %v4031_v17  ;;  %v4797_v6 = vunpack.i.l.bf16 %v4060_v28 }
 0x66b   :  { %2013 = vrot.lane.b32.xlu0 %v1861_v43, %s2919_s0  ;;  %2079 = vrot.lane.b32.xlu1 %v1894_v5, %s2919_s0  ;;  %v1874_v5 = vpack.c.bf16 %v1585_v52, %v1579_v56  ;;  %v4795_v56 = vunpack.i.l.bf16 %v4031_v17  ;;  %v4793_v52 = vunpack.i.l.bf16 %v4111_v32 }
 0x66e   :  { %v4128_v43 = vpop.permute.xlu0 %2833  ;;  %v4130_v30 = vpop.permute.xlu1 %2808 }
 0x66f   :  { %2027 = vrot.lane.b32.xlu0 %v1868_v12, %s2919_s0  ;;  %v4789_v38 = vunpack.i.h.bf16 %v4130_v30  ;;  %v4840_v0 = vunpack.i.l.bf16 %v4130_v30 }
 0x671   :  { %v1908_v46 = vpack.c.bf16 %v4789_v38, %v4788_v57  ;;  %v1873_v57 = vpack.c.bf16 %v1584_v22, %v1578_v19  ;;  %v1629_v38 = vsel %vm137_vm4, %v4792_v36, %v4791_v7  ;;  %v1634_v19 = vsel %vm137_vm4, %v4795_v56, %v4794_v2 }
 0x672   :  { %v4145_v12 = vpop.permute.xlu0 %2838  ;;  %v4147_v27 = vpop.permute.xlu1 %2823  ;;  %v4798_v22 = vunpack.i.h.bf16 %v4128_v43  ;;  %v1882_v36 = vpack.c.bf16 %v1634_v19, %v1629_v38  ;;  %v4808_v19 = vunpack.i.l.bf16 %v4045_v50 }
 0x673   :  { %2039 = vrot.lane.b32.xlu0 %v1874_v5, %s2919_s0  ;;  %v4796_v45 = vunpack.i.h.bf16 %v4147_v27  ;;  %2107 = vrot.lane.b32.xlu1 %v1908_v46, %s2919_s0  ;;  %v4801_v46 = vunpack.i.h.bf16 %v4005_v29 }
 0x675   :  { %v1865_v63 = vpack.c.bf16 %v4796_v45, %v4793_v52  ;;  %v1682_v52 = vsel %vm165_vm3, %v2781_v55, %v4797_v6  ;;  %v1676_v38 = vsel %vm165_vm3, %v2680_v53, %v4801_v46  ;;  %v4807_v55 = vunpack.i.h.bf16 %v4045_v50 }
 0x676   :  { %v4168_v5 = vpop.permute.xlu0 %2853  ;;  %v4170_v37 = vpop.permute.xlu1 %2828  ;;  %v4805_v6 = vunpack.i.l.bf16 %v4145_v12  ;;  %v4811_v53 = vunpack.i.l.bf16 %v4113_v39 }
 0x677   :  { %2037 = vrot.lane.b32.xlu0 %v1873_v57, %s2919_s0  ;;  %v4799_v7 = vunpack.i.l.bf16 %v4170_v37  ;;  %2021 = vrot.lane.b32.xlu1 %v1865_v63, %s2919_s0  ;;  %v4803_v57 = vunpack.i.l.bf16 %v4088_v24  ;;  %v4804_v63 = vunpack.i.h.bf16 %v3995_v42 }
 0x679   :  { %v1872_v2 = vpack.c.bf16 %v4798_v22, %v4799_v7  ;;  %v1888_v7 = vpack.c.bf16 %v1682_v52, %v1676_v38  ;;  %v1727_v3 = vsel %vm193_vm6, %v4804_v63, %v4803_v57  ;;  %v1733_v52 = vsel %vm193_vm6, %v4808_v19, %v4807_v55 }
 0x67a   :  { %v4192_v56 = vpop.permute.xlu0 %2858  ;;  %v4194_v45 = vpop.permute.xlu1 %2843  ;;  %v4812_v38 = vunpack.i.h.bf16 %v4168_v5  ;;  %v2660_v63 = vunpack.i.l.bf16 %v3993_v16  ;;  %v2751_v16 = vunpack.i.h.bf16 %v4033_v23 }
 0x67b   :  { %2055 = vrot.lane.b32.xlu0 %v1882_v36, %s2919_s0  ;;  %v4806_v22 = vunpack.i.h.bf16 %v4194_v45  ;;  %2035 = vrot.lane.b32.xlu1 %v1872_v2, %s2919_s0 }
 0x67d   :  { %v1879_v36 = vpack.c.bf16 %v4806_v22, %v4805_v6  ;;  %v2741_v6 = vunpack.i.h.bf16 %v4025_v40  ;;  %v1896_v22 = vpack.c.bf16 %v1733_v52, %v1727_v3  ;;  %v4823_v52 = vunpack.i.h.bf16 %v4111_v32 }
 0x67e   :  { %v4218_v46 = vpop.permute.xlu0 %2873  ;;  %v4220_v59 = vpop.permute.xlu1 %2848 }
 0x67f   :  { %2067 = vrot.lane.b32.xlu0 %v1888_v7, %s2919_s0  ;;  %v4813_v57 = vunpack.i.l.bf16 %v4220_v59  ;;  %2049 = vrot.lane.b32.xlu1 %v1879_v36, %s2919_s0  ;;  %v1782_v7 = vsel %vm221_vm5, %v2801_v13, %v4811_v53  ;;  %v1485_v3 = vsel %vm55_vm0, %v2741_v6, %v4836_v25  ;;  %v4837_v13 = vunpack.i.h.bf16 %v4009_v14 }
 0x680   :  { %v4838_v53 = vunpack.i.l.bf16 %v4009_v14  ;;  %v1479_v25 = vsel %vm55_vm0, %v2660_v63, %v4839_v49  ;;  %v4843_v49 = vunpack.i.h.bf16 %v4086_v62 }
 0x681   :  { %v1886_v55 = vpack.c.bf16 %v4812_v38, %v4813_v57  ;;  %v4822_v57 = vunpack.i.l.bf16 %v4086_v62 }
 0x682   :  { %v4244_v19 = vpop.permute.xlu0 %2883  ;;  %v4246_v36 = vpop.permute.xlu1 %2863  ;;  %v1776_v2 = vsel %vm221_vm5, %v4838_v53, %v4837_v13  ;;  %v1827_v53 = vsel %vm249_vm7, %v4841_v48, %v4840_v0  ;;  %v1478_v48 = vsel %vm55_vm0, %v3577_v21, %v2660_v63  ;;  %v2665_v0 = vunpack.i.l.bf16 %v3997_v34 }
 0x683   :  { %2083 = vrot.lane.b32.xlu0 %v1896_v22, %s2919_s0  ;;  %2063 = vrot.lane.b32.xlu1 %v1886_v55, %s2919_s0  ;;  %v1902_v47 = vpack.c.bf16 %v1782_v7, %v1776_v2  ;;  %v1860_v22 = vpack.c.bf16 %v1485_v3, %v1479_v25  ;;  %v1484_v55 = vsel %vm55_vm0, %v3577_v21, %v2741_v6  ;;  %v4824_v6 = vunpack.i.l.bf16 %v4013_v54 }
 0x684   :  { %v1833_v2 = vsel %vm249_vm7, %v4822_v57, %v4843_v49  ;;  %v4825_v25 = vunpack.i.l.bf16 %v4147_v27  ;;  %v4845_v57 = vunpack.i.l.bf16 %v4023_v31  ;;  %v4846_v63 = vunpack.i.l.bf16 %v4025_v40 }
 0x685   :  { %v1910_v7 = vpack.c.bf16 %v1833_v2, %v1827_v53  ;;  %v4847_v53 = vunpack.i.h.bf16 %v3997_v34  ;;  %v2831_v40 = vunpack.i.h.bf16 %v4170_v37  ;;  %v2766_v34 = vunpack.i.h.bf16 %v4037_v51 }
 0x686   :  { %v4270_v13 = vpop.permute.xlu0 %2893  ;;  %v4272_v38 = vpop.permute.xlu1 %2868  ;;  %v1535_v21 = vsel %vm83_vm2, %v2751_v16, %v4845_v57  ;;  %v4848_v57 = vunpack.i.h.bf16 %v4147_v27 }
 0x687   :  { %4842 = vst [vmem:[#allocation7_spill] sm:$0xff] %v4270_v13  ;;  %2095 = vrot.lane.b32.xlu0 %v1902_v47, %s2919_s0  ;;  %2011 = vrot.lane.b32.xlu1 %v1860_v22, %s2919_s0  ;;  %v4844_v47 = vunpack.i.h.bf16 %v4029_v8  ;;  %v1859_v22 = vpack.c.bf16 %v1484_v55, %v1478_v48  ;;  %v1481_v8 = vsel %vm55_vm0, %v4846_v63, %v4824_v6  ;;  %v4826_v55 = vunpack.i.h.bf16 %v4013_v54 }
 0x688   :  { %v1529_v2 = vsel %vm83_vm2, %v2665_v0, %v4847_v53  ;;  %v2760_v53 = vunpack.i.l.bf16 %v4027_v61 }
 0x689   :  { %v1487_v3 = vsel %vm55_vm0, %v4844_v47, %v4823_v52  ;;  %v1867_v48 = vpack.c.bf16 %v1535_v21, %v1529_v2 }
 0x68a   :  { %v2000_v13 = vpop.permute.xlu0 %1999  ;;  %v4294_v49 = vpop.permute.xlu1 %2878  ;;  %v1862_v47 = vpack.c.bf16 %v1487_v3, %v1481_v8  ;;  %v4849_v3 = vunpack.i.l.bf16 %v4111_v32  ;;  %v1528_v8 = vsel %vm83_vm2, %v3489_v20, %v2665_v0  ;;  %v2835_v0 = vunpack.i.l.bf16 %v4128_v43 }
 0x68b   :  { %2111 = vrot.lane.b32.xlu0 %v1910_v7, %s2919_s0  ;;  %2009 = vrot.lane.b32.xlu1 %v1859_v22, %s2919_s0  ;;  %v1489_v7 = vsel %vm55_vm0, %v4825_v25, %v4848_v57  ;;  %v1534_v22 = vsel %vm83_vm2, %v3489_v20, %v2751_v16  ;;  %v2705_v16 = vunpack.i.l.bf16 %v4003_v1  ;;  %v4852_v20 = vunpack.i.l.bf16 %v4033_v23 }
 0x68c   :  { %v1483_v21 = vsel %vm55_vm0, %v4826_v55, %v4849_v3  ;;  %v1866_v57 = vpack.c.bf16 %v1534_v22, %v1528_v8  ;;  %v2706_v3 = vunpack.i.h.bf16 %v4003_v1  ;;  %v2841_v23 = vunpack.i.h.bf16 %v4145_v12 }
 0x68d   :  { %v1864_v2 = vpack.c.bf16 %v1489_v7, %v1483_v21  ;;  %v1531_v61 = vsel %vm83_vm2, %v4852_v20, %v2705_v16  ;;  %v2726_v1 = vunpack.i.h.bf16 %v4011_v11 }
 0x68e   :  { %v4316_v52 = vpop.permute.xlu1 %2888  ;;  %v2002_v63 = vpop.permute.xlu0 %2001 }
 0x68f   :  { %2015 = vrot.lane.b32.xlu0 %v1862_v47, %s2919_s0  ;;  %2025 = vrot.lane.b32.xlu1 %v1867_v48, %s2919_s0  ;;  %v4850_v47 = vunpack.i.h.bf16 %v4023_v31  ;;  %v4851_v48 = vunpack.i.l.bf16 %v4037_v51  ;;  %v4853_v51 = vunpack.i.h.bf16 %v4001_v33  ;;  %v4856_v33 = vunpack.i.h.bf16 %v4047_v44 }
 0x691   :  { %v1537_v6 = vsel %vm83_vm2, %v4850_v47, %v2831_v40  ;;  %v1586_v55 = vsel %vm111_vm1, %v4851_v48, %v2766_v34  ;;  %v1580_v22 = vsel %vm111_vm1, %v4853_v51, %v2760_v53  ;;  %v4858_v51 = vunpack.i.h.bf16 %v3991_v18 }
 0x692   :  { %v1998_v25 = vpop.permute.xlu1 %1997  ;;  %v1869_v21 = vpack.c.bf16 %v1537_v6, %v1531_v61  ;;  %v1875_v8 = vpack.c.bf16 %v1586_v55, %v1580_v22  ;;  %v2786_v55 = vunpack.i.h.bf16 %v4060_v28  ;;  %v4857_v61 = vunpack.i.h.bf16 %v4128_v43 }
 0x693   :  { %2019 = vrot.lane.b32.xlu0 %v1864_v2, %s2919_s0  ;;  %v2121_v31 = vsel %vm403_vm8, %v3845_v10, %v1998_v25  ;;  %2023 = vrot.lane.b32.xlu1 %v1866_v57, %s2919_s0  ;;  %v2122_v7 = vsel %vm403_vm8, %v1998_v25, %v2000_v13  ;;  %v4854_v2 = vunpack.i.l.bf16 %v4170_v37  ;;  %v4361_v10 = vpop.permute.xlu0 %2005  ;;  %v4855_v25 = vunpack.i.l.bf16 %v4031_v17 }
 0x694   :  { %2233 = vmatprep.subr.bf16.mxu0 %v2122_v7  ;;  %v2123_v7 = vsel %vm403_vm8, %v2000_v13, %v2002_v63  ;;  %v4859_v22 = vunpack.i.l.bf16 %v3991_v18  ;;  %v1587_v13 = vsel %vm111_vm1, %v2766_v34, %v2841_v23  ;;  %v2711_v34 = vunpack.i.h.bf16 %v4017_v15 }
 0x695   :  { %v1533_v47 = vsel %vm83_vm2, %v2706_v3, %v4854_v2  ;;  %2234 = vmatpush1.bf16.msra.mxu0 %v2121_v31  ;;  %v1633_v6 = vsel %vm137_vm4, %v4856_v33, %v4855_v25  ;;  %v1539_v31 = vsel %vm83_vm2, %v2835_v0, %v4857_v61  ;;  %v2710_v25 = vunpack.i.l.bf16 %v4017_v15 }
 0x696   :  { %v2004_v57 = vpop.permute.xlu1 %2003  ;;  %v1628_v2 = vsel %vm137_vm4, %v4859_v22, %v4858_v51  ;;  %v4864_v51 = vunpack.i.h.bf16 %v4088_v24  ;;  %v2806_v22 = vunpack.i.h.bf16 %v4113_v39  ;;  %v4883_v37 = vunpack.i.h.bf16 %v4045_v50 }
 0x697   :  { %v4371_v48 = vsel %vm403_vm8, %v2004_v57, %v4361_v10  ;;  %2029 = vrot.lane.b32.xlu0 %v1869_v21, %s2919_s0  ;;  %v2124_v20 = vsel %vm403_vm8, %v2002_v63, %v2004_v57  ;;  %2041 = vrot.lane.b32.xlu1 %v1875_v8, %s2919_s0  ;;  %v2780_v21 = vunpack.i.l.bf16 %v4035_v58  ;;  %v1871_v57 = vpack.c.bf16 %v1539_v31, %v1533_v47 }
 0x698   :  { %2276 = vmatprep.subr.bf16.mxu1 %v2124_v20  ;;  %v1881_v33 = vpack.c.bf16 %v1633_v6, %v1628_v2  ;;  %v2845_v63 = vunpack.i.l.bf16 %v4194_v45  ;;  %v4860_v8 = vunpack.i.l.bf16 %v4060_v28  ;;  %v1581_v18 = vsel %vm111_vm1, %v2760_v53, %v2710_v25 }
 0x699   :  { %2277 = vmatpush1.bf16.msra.mxu1 %v2123_v7  ;;  %v4861_v58 = vunpack.i.h.bf16 %v4005_v29  ;;  %v1876_v6 = vpack.c.bf16 %v1587_v13, %v1581_v18  ;;  %v4862_v28 = vunpack.i.h.bf16 %v4194_v45  ;;  %v2851_v7 = vunpack.i.h.bf16 %v4220_v59 }
 0x69a   :  { %v1683_v20 = vsel %vm165_vm3, %v4860_v8, %v2786_v55  ;;  %v4863_v53 = vunpack.i.l.bf16 %v4045_v50  ;;  %v4865_v2 = vunpack.i.l.bf16 %v4145_v12  ;;  %v4867_v13 = vunpack.i.l.bf16 %v3995_v42 }
 0x69b   :  { %2033 = vrot.lane.b32.xlu0 %v1871_v57, %s2919_s0  ;;  %2053 = vrot.lane.b32.xlu1 %v1881_v33, %s2919_s0  ;;  %v1677_v47 = vsel %vm165_vm3, %v4861_v58, %v2780_v21  ;;  %v1589_v31 = vsel %vm111_vm1, %v2845_v63, %v4862_v28  ;;  %v4866_v33 = vunpack.i.h.bf16 %v3995_v42  ;;  %v2715_v18 = vunpack.i.l.bf16 %v4007_v9 }
 0x69c   :  { %v1889_v61 = vpack.c.bf16 %v1683_v20, %v1677_v47  ;;  %v1732_v29 = vsel %vm193_vm6, %v4864_v51, %v4863_v53  ;;  %v1583_v57 = vsel %vm111_vm1, %v2711_v34, %v4865_v2  ;;  %v4868_v47 = vunpack.i.h.bf16 %v4031_v17  ;;  %v4452_v51 = vld [vmem:[%s4768_s4 + $0x4] ss:$8 sps:$4 sm:$0xff]  }
 0x69d   :  { %v1726_v8 = vsel %vm193_vm6, %v4867_v13, %v4866_v33  ;;  %v1878_v20 = vpack.c.bf16 %v1589_v31, %v1583_v57  ;;  %v2716_v42 = vunpack.i.h.bf16 %v4007_v9  ;;  %v4870_v31 = vunpack.i.l.bf16 %v4047_v44  ;;  %2393 = vmatprep.mubr.msk.bf16.mxu0 %vm2229_vm11, %v4452_v51  ;;  %2394 = vmatprep.mubr.msk.bf16.mxu1 %vm2229_vm11, %v4452_v51 }
 0x69e   :  { %v1895_v58 = vpack.c.bf16 %v1732_v29, %v1726_v8  ;;  %v2855_v17 = vunpack.i.l.bf16 %v4168_v5  ;;  %v4871_v29 = vunpack.i.l.bf16 %v4058_v60  ;;  %v4872_v2 = vunpack.i.h.bf16 %v4009_v14 }
 0x69f   :  { %2043 = vrot.lane.b32.xlu0 %v1876_v6, %s2919_s0  ;;  %2069 = vrot.lane.b32.xlu1 %v1889_v61, %s2919_s0  ;;  %v1635_v6 = vsel %vm137_vm4, %v4868_v47, %v2851_v7  ;;  %v4869_v61 = vunpack.i.l.bf16 %v4113_v39  ;;  %v1630_v53 = vsel %vm137_vm4, %v4870_v31, %v2715_v18  ;;  %v2861_v44 = vunpack.i.h.bf16 %v4192_v56 }
 0x6a0   :  { %v1777_v57 = vsel %vm221_vm5, %v4872_v2, %v4871_v29  ;;  %v1883_v33 = vpack.c.bf16 %v1635_v6, %v1630_v53  ;;  %v4873_v8 = vunpack.i.l.bf16 %v4220_v59  ;;  %v4874_v60 = vunpack.i.l.bf16 %v4086_v62 }
 0x6a1   :  { %v1783_v28 = vsel %vm221_vm5, %v4869_v61, %v2806_v22  ;;  %v4875_v14 = vunpack.i.h.bf16 %v4130_v30  ;;  %v4876_v47 = vunpack.i.h.bf16 %v4168_v5  ;;  %v4877_v61 = vunpack.i.h.bf16 %v3999_v41 }
 0x6a2   :  { %v1903_v13 = vpack.c.bf16 %v1783_v28, %v1777_v57  ;;  %v4878_v28 = vunpack.i.l.bf16 %v3999_v41  ;;  %v2720_v53 = vunpack.i.l.bf16 %v4021_v35  ;;  %v1684_v57 = vsel %vm165_vm3, %v2786_v55, %v2861_v44 }
 0x6a3   :  { %2047 = vrot.lane.b32.xlu0 %v1878_v20, %s2919_s0  ;;  %2081 = vrot.lane.b32.xlu1 %v1895_v58, %s2919_s0  ;;  %v1632_v20 = vsel %vm137_vm4, %v2716_v42, %v4873_v8  ;;  %v1832_v58 = vsel %vm249_vm7, %v4875_v14, %v4874_v60  ;;  %v1637_v6 = vsel %vm137_vm4, %v2855_v17, %v4876_v47  ;;  %v2865_v5 = vunpack.i.l.bf16 %v4246_v36 }
 0x6a4   :  { %v1826_v31 = vsel %vm249_vm7, %v4878_v28, %v4877_v61  ;;  %v1885_v29 = vpack.c.bf16 %v1637_v6, %v1632_v20  ;;  %v4879_v8 = vunpack.i.l.bf16 %v4147_v27  ;;  %v1678_v41 = vsel %vm165_vm3, %v2780_v21, %v2720_v53 }
 0x6a5   :  { %v1909_v2 = vpack.c.bf16 %v1832_v58, %v1826_v31  ;;  %v2860_v14 = vunpack.i.l.bf16 %v4192_v56  ;;  %v4881_v55 = vunpack.i.h.bf16 %v4013_v54  ;;  %v4882_v20 = vunpack.i.l.bf16 %v4013_v54 }
 0x6a6   :  { %v1890_v58 = vpack.c.bf16 %v1684_v57, %v1678_v41  ;;  %v2721_v27 = vunpack.i.h.bf16 %v4021_v35  ;;  %v2871_v6 = vunpack.i.h.bf16 %v4272_v38  ;;  %v1538_v56 = vsel %vm83_vm2, %v2831_v40, %v2835_v0 }
 0x6a7   :  { %2057 = vrot.lane.b32.xlu0 %v1883_v33, %s2919_s0  ;;  %2097 = vrot.lane.b32.xlu1 %v1903_v13, %s2919_s0  ;;  %v2866_v33 = vunpack.i.h.bf16 %v4246_v36  ;;  %v4880_v13 = vunpack.i.h.bf16 %v4111_v32  ;;  %v1482_v36 = vsel %vm55_vm0, %v4882_v20, %v4881_v55  ;;  %v1532_v35 = vsel %vm83_vm2, %v2705_v16, %v2706_v3 }
 0x6a8   :  { %v1680_v54 = vsel %vm165_vm3, %v2721_v27, %v2860_v14  ;;  %v2725_v61 = vunpack.i.l.bf16 %v4011_v11  ;;  %v1870_v43 = vpack.c.bf16 %v1538_v56, %v1532_v35  ;;  %v1734_v40 = vsel %vm193_vm6, %v4883_v37, %v2871_v6 }
 0x6a9   :  { %v1488_v60 = vsel %vm55_vm0, %v4880_v13, %v4879_v8  ;;  %v1686_v47 = vsel %vm165_vm3, %v2865_v5, %v2866_v33  ;;  %v2870_v0 = vunpack.i.l.bf16 %v4272_v38  ;;  %v1588_v28 = vsel %vm111_vm1, %v2841_v23, %v2845_v63 }
 0x6aa   :  { %v1863_v32 = vpack.c.bf16 %v1488_v60, %v1482_v36  ;;  %v1892_v21 = vpack.c.bf16 %v1686_v47, %v1680_v54  ;;  %v4884_v16 = vunpack.i.l.bf16 %v4088_v24  ;;  %v2876_v50 = vunpack.i.h.bf16 %v4218_v46  ;;  %v4889_v36 = vld [vmem:[#allocation7_spill] sm:$0xff] }
 0x6ab   :  { %2061 = vrot.lane.b32.xlu0 %v1885_v29, %s2919_s0  ;;  %2109 = vrot.lane.b32.xlu1 %v1909_v2, %s2919_s0  ;;  %v2875_v31 = vunpack.i.l.bf16 %v4218_v46  ;;  %v1582_v45 = vsel %vm111_vm1, %v2710_v25, %v2711_v34  ;;  %v1730_v11 = vsel %vm193_vm6, %v2726_v1, %v2870_v0  ;;  %v2881_v24 = vunpack.i.h.bf16 %v4294_v49 }
 0x6ac   :  { %v1728_v3 = vsel %vm193_vm6, %v4884_v16, %v2725_v61  ;;  %v1877_v38 = vpack.c.bf16 %v1588_v28, %v1582_v45  ;;  %v1636_v23 = vsel %vm137_vm4, %v2851_v7, %v2855_v17  ;;  %v1631_v15 = vsel %vm137_vm4, %v2715_v18, %v2716_v42 }
 0x6ad   :  { %v1897_v12 = vpack.c.bf16 %v1734_v40, %v1728_v3  ;;  %v1736_v46 = vsel %vm193_vm6, %v2875_v31, %v2876_v50  ;;  %v1884_v63 = vpack.c.bf16 %v1636_v23, %v1631_v15  ;;  %v2880_v34 = vunpack.i.l.bf16 %v4294_v49  ;;  %v4618_v15 = vpop.permute.xlu1 %2007 }
 0x6ae   :  { %v1899_v25 = vpack.c.bf16 %v1736_v46, %v1730_v11  ;;  %v1784_v59 = vsel %vm221_vm5, %v2806_v22, %v2881_v24  ;;  %v1685_v7 = vsel %vm165_vm3, %v2861_v44, %v2865_v5  ;;  %v2731_v17 = vunpack.i.h.bf16 %v4015_v4  ;;  %v4885_v44 = vld [vmem:[#allocation2_spill] sm:$0xff] }
 0x6af   :  { %2071 = vrot.lane.b32.xlu0 %v1890_v58, %s2919_s0  ;;  %2017 = vrot.lane.b32.xlu1 %v1863_v32, %s2919_s0  ;;  %v2886_v29 = vunpack.i.h.bf16 %v4244_v19  ;;  %v2885_v9 = vunpack.i.l.bf16 %v4244_v19  ;;  %v1679_v18 = vsel %vm165_vm3, %v2720_v53, %v2721_v27  ;;  %v1904_v49 = vpack.c.bf16 %v1784_v59, %v4073_v26  ;;  %v4886_v5 = vld [vmem:[#allocation6_spill] sm:$0xff] }
 0x6b0   :  { %v1891_v42 = vpack.c.bf16 %v1685_v7, %v1679_v18  ;;  %v1780_v39 = vsel %vm221_vm5, %v2731_v17, %v2880_v34  ;;  %v2891_v22 = vunpack.i.h.bf16 %v4316_v52  ;;  %v1687_v2 = vsel %vm165_vm3, %v2866_v33, %v4885_v44 }
 0x6b1   :  { %v1786_v57 = vsel %vm221_vm5, %v2885_v9, %v2886_v29  ;;  %v1681_v19 = vsel %vm165_vm3, %v2860_v14, %v4885_v44  ;;  %v2735_v26 = vunpack.i.l.bf16 %v4886_v5  ;;  %v4887_v13 = vunpack.i.h.bf16 %v4086_v62 }
 0x6b2   :  { %v1906_v53 = vpack.c.bf16 %v1786_v57, %v1780_v39  ;;  %v1893_v8 = vpack.c.bf16 %v1687_v2, %v1681_v19  ;;  %v2890_v41 = vunpack.i.l.bf16 %v4316_v52  ;;  %v1735_v33 = vsel %vm193_vm6, %v2871_v6, %v2875_v31  ;;  %v4890_v6 = vld [vmem:[#allocation3_spill] sm:$0xff] }
 0x6b3   :  { %2075 = vrot.lane.b32.xlu0 %v1892_v21, %s2919_s0  ;;  %2031 = vrot.lane.b32.xlu1 %v1870_v43, %s2919_s0  ;;  %v1834_v60 = vsel %vm249_vm7, %v4887_v13, %v2891_v22  ;;  %v2736_v55 = vunpack.i.h.bf16 %v4886_v5  ;;  %v4888_v20 = vunpack.i.l.bf16 %v4130_v30  ;;  %v2896_v58 = vunpack.i.h.bf16 %v4889_v36 }
 0x6b4   :  { %v2895_v27 = vunpack.i.l.bf16 %v4889_v36  ;;  %v1729_v62 = vsel %vm193_vm6, %v2725_v61, %v2726_v1  ;;  %v1731_v56 = vsel %vm193_vm6, %v2870_v0, %v4890_v6  ;;  %v1737_v54 = vsel %vm193_vm6, %v2876_v50, %v4890_v6  ;;  %v4892_v0 = vld [vmem:[#allocation4_spill] sm:$0xff] }
 0x6b5   :  { %v1828_v14 = vsel %vm249_vm7, %v4888_v20, %v2735_v26  ;;  %v1898_v52 = vpack.c.bf16 %v1735_v33, %v1729_v62  ;;  %v1830_v47 = vsel %vm249_vm7, %v2736_v55, %v2890_v41  ;;  %v1900_v21 = vpack.c.bf16 %v1737_v54, %v1731_v56 }
 0x6b6   :  { %v1911_v32 = vpack.c.bf16 %v1834_v60, %v1828_v14  ;;  %v1836_v30 = vsel %vm249_vm7, %v2895_v27, %v2896_v58  ;;  %v1785_v61 = vsel %vm221_vm5, %v2881_v24, %v2885_v9  ;;  %v4891_v43 = vunpack.i.l.bf16 %v4015_v4 }
 0x6b7   :  { %2085 = vrot.lane.b32.xlu0 %v1897_v12, %s2919_s0  ;;  %2045 = vrot.lane.b32.xlu1 %v1877_v38, %s2919_s0  ;;  %v1913_v35 = vpack.c.bf16 %v1836_v30, %v1830_v47  ;;  %v1781_v28 = vsel %vm221_vm5, %v2880_v34, %v4892_v0  ;;  %v1787_v1 = vsel %vm221_vm5, %v2886_v29, %v4892_v0  ;;  %v2926_v4 = vmov 4   ;;  %v2909_v12 = vld [vmem:[%s4766_s5] sm:$0xff]  ;;  %v4893_v38 = vld [vmem:[#allocation5_spill] sm:$0xff]  ;;  %v2910_v34 = vld [vmem:[%s4766_s5 + $0x8] sm:$0xff] }
 0x6b8   :  { %v1779_v37 = vsel %vm221_vm5, %v4891_v43, %v2731_v17  ;;  %v1907_v16 = vpack.c.bf16 %v1787_v1, %v1781_v28  ;;  %v1835_v3 = vsel %vm249_vm7, %v2891_v22, %v2895_v27  ;;  %v1829_v50 = vsel %vm249_vm7, %v2735_v26, %v2736_v55  ;;  %2897 = vset.pattern.permute.xlu0 %v2926_v4 }
 0x6b9   :  { %v1905_v40 = vpack.c.bf16 %v1785_v61, %v1779_v37  ;;  %2898 = vset.pattern.permute.xlu1 %v2926_v4  ;;  %v1912_v45 = vpack.c.bf16 %v1835_v3, %v1829_v50  ;;  %v1831_v11 = vsel %vm249_vm7, %v2890_v41, %v4893_v38  ;;  %v1837_v24 = vsel %vm249_vm7, %v2896_v58, %v4893_v38 }
 0x6ba   :  { %v1914_v46 = vpack.c.bf16 %v1837_v24, %v1831_v11  ;;  %v2126_v4 = vsel %vm403_vm8, %v4361_v10, %v4618_v15 }
 0x6bb   :  { %2089 = vrot.lane.b32.xlu0 %v1899_v25, %s2919_s0  ;;  %2059 = vrot.lane.b32.xlu1 %v1884_v63, %s2919_s0 }
 0x6bf   :  { %2099 = vrot.lane.b32.xlu0 %v1904_v49, %s2919_s0  ;;  %2073 = vrot.lane.b32.xlu1 %v1891_v42, %s2919_s0 }
 0x6c3   :  { %2103 = vrot.lane.b32.xlu0 %v1906_v53, %s2919_s0  ;;  %2077 = vrot.lane.b32.xlu1 %v1893_v8, %s2919_s0 }
 0x6c7   :  { %2113 = vrot.lane.b32.xlu0 %v1911_v32, %s2919_s0  ;;  %2087 = vrot.lane.b32.xlu1 %v1898_v52, %s2919_s0 }
 0x6cb   :  { %2117 = vrot.lane.b32.xlu0 %v1913_v35, %s2919_s0  ;;  %2091 = vrot.lane.b32.xlu1 %v1900_v21, %s2919_s0 }
 0x6cf   :  { %2101 = vrot.lane.b32.xlu1 %v1905_v40, %s2919_s0  ;;  %1916 = vperm.xlu0 %2897, %v2909_v12  }
 0x6d1   :  { %v2066_v31 = vpop.permute.xlu0 %2065 }
 0x6d3   :  { %2105 = vrot.lane.b32.xlu1 %v1907_v16, %s2919_s0 }
 0x6d5   :  { %v2052_v63 = vpop.permute.xlu1 %2051 }
 0x6d7   :  { %2115 = vrot.lane.b32.xlu1 %v1912_v45, %s2919_s0 }
 0x6d9   :  { %v4616_v23 = vpop.permute.xlu0 %2093 }
 0x6db   :  { %2119 = vrot.lane.b32.xlu1 %v1914_v46, %s2919_s0 }
 0x6dd   :  { %v4621_v25 = vpop.permute.xlu0 %2013  ;;  %v2080_v7 = vpop.permute.xlu1 %2079 }
 0x6df   :  { %1920 = vperm.xlu1 %2898, %v2910_v34  }
 0x6e1   :  { %v4626_v59 = vpop.permute.xlu0 %2027 }
 0x6e5   :  { %v2040_v17 = vpop.permute.xlu0 %2039  ;;  %v2108_v29 = vpop.permute.xlu1 %2107 }
 0x6e9   :  { %v2038_v9 = vpop.permute.xlu0 %2037  ;;  %v4628_v18 = vpop.permute.xlu1 %2021 }
 0x6ea   :  { %v2139_v27 = vsel %vm403_vm8, %v2038_v9, %v2040_v17 }
 0x6ed   :  { %v4630_v49 = vpop.permute.xlu0 %2055  ;;  %v4632_v42 = vpop.permute.xlu1 %2035 }
 0x6f1   :  { %v2068_v39 = vpop.permute.xlu0 %2067  ;;  %v4634_v22 = vpop.permute.xlu1 %2049 }
 0x6f2   :  { %v2151_v54 = vsel %vm403_vm8, %v2066_v31, %v2068_v39  ;;  %v4673_v31 = vld [vmem:[%s4768_s4] ss:$8 sps:$4 sm:$0xff]  }
 0x6f5   :  { %v4636_v44 = vpop.permute.xlu0 %2083  ;;  %v4638_v2 = vpop.permute.xlu1 %2063 }
 0x6f9   :  { %v2096_v57 = vpop.permute.xlu0 %2095  ;;  %v2012_v19 = vpop.permute.xlu1 %2011 }
 0x6fa   :  { %v2128_v53 = vsel %vm403_vm8, %v2012_v19, %v4621_v25  ;;  %v2163_v28 = vsel %vm403_vm8, %v4616_v23, %v2096_v57 }
 0x6fb   :  { %2235 = vmatprep.subr.bf16.mxu0 %v2128_v53 }
 0x6fd   :  { %v4642_v5 = vpop.permute.xlu0 %2111  ;;  %v2010_v26 = vpop.permute.xlu1 %2009 }
 0x6fe   :  { %v2127_v8 = vsel %vm403_vm8, %v2010_v26, %v2012_v19 }
 0x6ff   :  { %2236 = vmatpush1.bf16.msra.mxu0 %v2127_v8 }
 0x701   :  { %v2016_v13 = vpop.permute.xlu0 %2015  ;;  %v2026_v60 = vpop.permute.xlu1 %2025 }
 0x702   :  { %v2134_v41 = vsel %vm403_vm8, %v2026_v60, %v4626_v59  ;;  %v2129_v38 = vsel %vm403_vm8, %v4621_v25, %v2016_v13 }
 0x703   :  { %2237 = vmatprep.subr.bf16.mxu0 %v2134_v41 }
 0x705   :  { %v2020_v33 = vpop.permute.xlu0 %2019  ;;  %v2024_v55 = vpop.permute.xlu1 %2023 }
 0x706   :  { %v2133_v20 = vsel %vm403_vm8, %v2024_v55, %v2026_v60  ;;  %v2132_v24 = vsel %vm403_vm8, %v2020_v33, %v4628_v18 }
 0x707   :  { %2238 = vmatpush1.bf16.msra.mxu0 %v2133_v20 }
 0x709   :  { %v2030_v14 = vpop.permute.xlu0 %2029  ;;  %v2042_v36 = vpop.permute.xlu1 %2041 }
 0x70a   :  { %v2140_v58 = vsel %vm403_vm8, %v2040_v17, %v2042_v36  ;;  %v2135_v46 = vsel %vm403_vm8, %v4626_v59, %v2030_v14 }
 0x70b   :  { %2239 = vmatprep.subr.bf16.mxu0 %v2140_v58 }
 0x70c   :  { %2240 = vmatpush1.bf16.msra.mxu0 %v2139_v27 }
 0x70d   :  { %v2034_v62 = vpop.permute.xlu0 %2033  ;;  %v2054_v32 = vpop.permute.xlu1 %2053 }
 0x70e   :  { %v2145_v52 = vsel %vm403_vm8, %v2052_v63, %v2054_v32  ;;  %v2146_v47 = vsel %vm403_vm8, %v2054_v32, %v4630_v49 }
 0x70f   :  { %2241 = vmatprep.subr.bf16.mxu0 %v2146_v47 }
 0x710   :  { %2242 = vmatpush1.bf16.msra.mxu0 %v2145_v52 }
 0x711   :  { %v2044_v6 = vpop.permute.xlu0 %2043  ;;  %v4653_v56 = vpop.permute.xlu1 %2069 }
 0x712   :  { %v2152_v30 = vsel %vm403_vm8, %v2068_v39, %v4653_v56 }
 0x713   :  { %2243 = vmatprep.subr.bf16.mxu0 %v2152_v30 }
 0x714   :  { %2244 = vmatpush1.bf16.msra.mxu0 %v2151_v54 }
 0x715   :  { %v2048_v35 = vpop.permute.xlu0 %2047  ;;  %v2082_v21 = vpop.permute.xlu1 %2081 }
 0x716   :  { %v2157_v61 = vsel %vm403_vm8, %v2080_v7, %v2082_v21  ;;  %v2158_v43 = vsel %vm403_vm8, %v2082_v21, %v4636_v44  ;;  %v2144_v59 = vsel %vm403_vm8, %v2048_v35, %v4634_v22 }
 0x717   :  { %2245 = vmatprep.subr.bf16.mxu0 %v2158_v43 }
 0x718   :  { %2246 = vmatpush1.bf16.msra.mxu0 %v2157_v61 }
 0x719   :  { %v2058_v37 = vpop.permute.xlu0 %2057  ;;  %v4661_v40 = vpop.permute.xlu1 %2097 }
 0x71a   :  { %v2164_v0 = vsel %vm403_vm8, %v2096_v57, %v4661_v40  ;;  %v2147_v9 = vsel %vm403_vm8, %v4630_v49, %v2058_v37 }
 0x71b   :  { %2247 = vmatprep.subr.bf16.mxu0 %v2164_v0 }
 0x71c   :  { %2248 = vmatpush1.bf16.msra.mxu0 %v2163_v28 }
 0x71d   :  { %v2062_v1 = vpop.permute.xlu0 %2061  ;;  %v2110_v16 = vpop.permute.xlu1 %2109 }
 0x71e   :  { %v2169_v3 = vsel %vm403_vm8, %v2108_v29, %v2110_v16  ;;  %v2170_v50 = vsel %vm403_vm8, %v2110_v16, %v4642_v5  ;;  %v2150_v39 = vsel %vm403_vm8, %v2062_v1, %v4638_v2 }
 0x71f   :  { %2249 = vmatprep.subr.bf16.mxu0 %v2170_v50 }
 0x720   :  { %2250 = vmatpush1.bf16.msra.mxu0 %v2169_v3 }
 0x721   :  { %2319 = vmatprep.subr.bf16.mxu0 %v2126_v4  ;;  %v2018_v45 = vpop.permute.xlu1 %2017  ;;  %v2072_v11 = vpop.permute.xlu0 %2071 }
 0x722   :  { %v2130_v12 = vsel %vm403_vm8, %v2016_v13, %v2018_v45  ;;  %v2131_v15 = vsel %vm403_vm8, %v2018_v45, %v2020_v33  ;;  %v2153_v19 = vsel %vm403_vm8, %v4653_v56, %v2072_v11 }
 0x723   :  { %2278 = vmatprep.subr.bf16.mxu1 %v2130_v12  ;;  %2266 = vmatmul.mubr.bf16.vlgmr.msra.gmra.mrb[8].mxu0 %v4673_v31 }
 0x724   :  { %2279 = vmatpush1.bf16.msra.mxu1 %v2129_v38  ;;  %2320 = vmatpush1.bf16.msra.mxu0 %v4371_v48  ;;  %v2138_v48 = vsel %vm403_vm8, %v2034_v62, %v4632_v42 }
 0x725   :  { %2321 = vmatprep.subr.bf16.mxu0 %v2132_v24  ;;  %v2032_v23 = vpop.permute.xlu1 %2031  ;;  %2395 = vmatprep.mubr.msk.bf16.mxu0 %vm2229_vm11, %v4452_v51  ;;  %v2076_v25 = vpop.permute.xlu0 %2075  ;;  %v2141_v51 = vsel %vm403_vm8, %v2042_v36, %v2044_v6 }
 0x726   :  { %v2136_v10 = vsel %vm403_vm8, %v2030_v14, %v2032_v23  ;;  %v2137_v7 = vsel %vm403_vm8, %v2032_v23, %v2034_v62 }
 0x727   :  { %2280 = vmatprep.subr.bf16.mxu1 %v2136_v10 }
 0x728   :  { %2281 = vmatpush1.bf16.msra.mxu1 %v2135_v46  ;;  %2322 = vmatpush1.bf16.msra.mxu0 %v2131_v15 }
 0x729   :  { %2323 = vmatprep.subr.bf16.mxu0 %v2138_v48  ;;  %v2046_v63 = vpop.permute.xlu1 %2045  ;;  %v2086_v18 = vpop.permute.xlu0 %2085 }
 0x72a   :  { %v2142_v34 = vsel %vm403_vm8, %v2044_v6, %v2046_v63  ;;  %v2143_v42 = vsel %vm403_vm8, %v2046_v63, %v2048_v35  ;;  %v2159_v41 = vsel %vm403_vm8, %v4636_v44, %v2086_v18 }
 0x72b   :  { %2282 = vmatprep.subr.bf16.mxu1 %v2142_v34 }
 0x72c   :  { %2283 = vmatpush1.bf16.msra.mxu1 %v2141_v51  ;;  %2324 = vmatpush1.bf16.msra.mxu0 %v2137_v7 }
 0x72d   :  { %2325 = vmatprep.subr.bf16.mxu0 %v2144_v59  ;;  %v2060_v17 = vpop.permute.xlu1 %2059  ;;  %v2090_v49 = vpop.permute.xlu0 %2089 }
 0x72e   :  { %v2148_v29 = vsel %vm403_vm8, %v2058_v37, %v2060_v17  ;;  %v2149_v53 = vsel %vm403_vm8, %v2060_v17, %v2062_v1 }
 0x72f   :  { %2284 = vmatprep.subr.bf16.mxu1 %v2148_v29 }
 0x730   :  { %2285 = vmatpush1.bf16.msra.mxu1 %v2147_v9  ;;  %2326 = vmatpush1.bf16.msra.mxu0 %v2143_v42 }
 0x731   :  { %2327 = vmatprep.subr.bf16.mxu0 %v2150_v39  ;;  %v2074_v57 = vpop.permute.xlu1 %2073  ;;  %v2100_v33 = vpop.permute.xlu0 %2099 }
 0x732   :  { %v2154_v22 = vsel %vm403_vm8, %v2072_v11, %v2074_v57  ;;  %v2155_v13 = vsel %vm403_vm8, %v2074_v57, %v2076_v25  ;;  %v2165_v62 = vsel %vm403_vm8, %v4661_v40, %v2100_v33 }
 0x733   :  { %2286 = vmatprep.subr.bf16.mxu1 %v2154_v22 }
 0x734   :  { %2287 = vmatpush1.bf16.msra.mxu1 %v2153_v19  ;;  %2328 = vmatpush1.bf16.msra.mxu0 %v2149_v53 }
 0x735   :  { %v2078_v26 = vpop.permute.xlu1 %2077  ;;  %v2104_v36 = vpop.permute.xlu0 %2103 }
 0x736   :  { %v2156_v8 = vsel %vm403_vm8, %v2076_v25, %v2078_v26 }
 0x737   :  { %2329 = vmatprep.subr.bf16.mxu0 %v2156_v8 }
 0x738   :  { %2330 = vmatpush1.bf16.msra.mxu0 %v2155_v13 }
 0x739   :  { %v2088_v2 = vpop.permute.xlu1 %2087  ;;  %v2114_v52 = vpop.permute.xlu0 %2113 }
 0x73a   :  { %v2160_v60 = vsel %vm403_vm8, %v2086_v18, %v2088_v2  ;;  %v2161_v14 = vsel %vm403_vm8, %v2088_v2, %v2090_v49  ;;  %v2171_v30 = vsel %vm403_vm8, %v4642_v5, %v2114_v52 }
 0x73b   :  { %2288 = vmatprep.subr.bf16.mxu1 %v2160_v60 }
 0x73c   :  { %2289 = vmatpush1.bf16.msra.mxu1 %v2159_v41 }
 0x73d   :  { %v2092_v55 = vpop.permute.xlu1 %2091  ;;  %v2118_v54 = vpop.permute.xlu0 %2117 }
 0x73e   :  { %v2162_v20 = vsel %vm403_vm8, %v2090_v49, %v2092_v55 }
 0x73f   :  { %2331 = vmatprep.subr.bf16.mxu0 %v2162_v20 }
 0x740   :  { %2332 = vmatpush1.bf16.msra.mxu0 %v2161_v14 }
 0x741   :  { %v2102_v58 = vpop.permute.xlu1 %2101 }
 0x742   :  { %v2166_v27 = vsel %vm403_vm8, %v2100_v33, %v2102_v58  ;;  %v2167_v47 = vsel %vm403_vm8, %v2102_v58, %v2104_v36 }
 0x743   :  { %2290 = vmatprep.subr.bf16.mxu1 %v2166_v27 }
 0x744   :  { %2291 = vmatpush1.bf16.msra.mxu1 %v2165_v62 }
 0x745   :  { %v2106_v44 = vpop.permute.xlu1 %2105 }
 0x746   :  { %v2168_v32 = vsel %vm403_vm8, %v2104_v36, %v2106_v44 }
 0x747   :  { %2333 = vmatprep.subr.bf16.mxu0 %v2168_v32 }
 0x748   :  { %2334 = vmatpush1.bf16.msra.mxu0 %v2167_v47 }
 0x749   :  { %v2116_v6 = vpop.permute.xlu1 %2115 }
 0x74a   :  { %v2172_v56 = vsel %vm403_vm8, %v2114_v52, %v2116_v6  ;;  %v2173_v61 = vsel %vm403_vm8, %v2116_v6, %v2118_v54 }
 0x74b   :  { %2292 = vmatprep.subr.bf16.mxu1 %v2172_v56 }
 0x74c   :  { %2293 = vmatpush1.bf16.msra.mxu1 %v2171_v30 }
 0x74d   :  { %v2120_v35 = vpop.permute.xlu1 %2119 }
 0x74e   :  { %v2174_v21 = vsel %vm403_vm8, %v2118_v54, %v2120_v35  ;;  %v1917_v43 = vpop.permute.xlu0 %1916 }
 0x74f   :  { %2335 = vmatprep.subr.bf16.mxu0 %v2174_v21  ;;  %2309 = vmatmul.mubr.bf16.vlgmr.msra.gmra.mrb[16].mxu1 %v4673_v31 }
 0x750   :  { %2336 = vmatpush1.bf16.msra.mxu0 %v2173_v61 }
 0x753   :  { %2352 = vmatmul.mubr.bf16.vlgmr.msra.gmra.mrb[12].mxu0 %v4673_v31 }
 0x75e   :  { %v1921_v40 = vpop.permute.xlu1 %1920 }
 0x7f6   :  { %v2267_v37 = vpop.f32.mrb[8].mxu0 }
 0x7f7   :  { %v2269_v0 = vpop.f32.mrb[9].mxu0  ;;  %v2268_v28 = vadd.f32 %v2267_v37, %v1917_v43 }
 0x7f8   :  { %v2271_v5 = vpop.f32.mrb[10].mxu0  ;;  %v2270_v1 = vadd.f32 %v2269_v0, %v1917_v43 }
 0x7f9   :  { %2362 = vst [vmem:[%s4769_s6] sm:$0xff] %v2268_v28  ;;  %v2273_v16 = vpop.f32.mrb[11].mxu0  ;;  %v2272_v3 = vadd.f32 %v2271_v5, %v1921_v40 }
 0x7fa   :  { %2363 = vst [vmem:[%s4769_s6 + $0x8] sm:$0xff] %v2270_v1  ;;  %v2274_v50 = vadd.f32 %v2273_v16, %v1921_v40 }
 0x7fb   :  { %2368 = vst [vmem:[%s4769_s6 + $0x30] sm:$0xff] %v2272_v3 }
 0x7fc   :  { %2369 = vst [vmem:[%s4769_s6 + $0x38] sm:$0xff] %v2274_v50 }
 0x822   :  { %v2310_v31 = vpop.f32.mrb[16].mxu1 }
 0x823   :  { %v2311_v4 = vadd.f32 %v2310_v31, %v1917_v43  ;;  %v2312_v45 = vpop.f32.mrb[17].mxu1 }
 0x824   :  { %v2313_v12 = vadd.f32 %v2312_v45, %v1917_v43  ;;  %v2314_v38 = vpop.f32.mrb[18].mxu1 }
 0x825   :  { %2364 = vst [vmem:[%s4769_s6 + $0x10] sm:$0xff] %v2311_v4  ;;  %v2315_v11 = vadd.f32 %v2314_v38, %v1921_v40  ;;  %v2316_v24 = vpop.f32.mrb[19].mxu1 }
 0x826   :  { %2365 = vst [vmem:[%s4769_s6 + $0x18] sm:$0xff] %v2313_v12  ;;  %v2317_v23 = vadd.f32 %v2316_v24, %v1921_v40  ;;  %v2353_v10 = vpop.f32.mrb[12].mxu0 }
 0x827   :  { %2370 = vst [vmem:[%s4769_s6 + $0x40] sm:$0xff] %v2315_v11  ;;  %v2354_v46 = vadd.f32 %v2353_v10, %v1917_v43  ;;  %v2355_v15 = vpop.f32.mrb[13].mxu0 }
 0x828   :  { %2371 = vst [vmem:[%s4769_s6 + $0x48] sm:$0xff] %v2317_v23  ;;  %v2356_v48 = vadd.f32 %v2355_v15, %v1917_v43  ;;  %v2357_v25 = vpop.f32.mrb[14].mxu0 }
 0x829   :  { %2366 = vst [vmem:[%s4769_s6 + $0x20] sm:$0xff] %v2354_v46  ;;  %v2358_v63 = vadd.f32 %v2357_v25, %v1921_v40  ;;  %v2359_v34 = vpop.f32.mrb[15].mxu0 }
 0x82a   :  { %2367 = vst [vmem:[%s4769_s6 + $0x28] sm:$0xff] %v2356_v48  ;;  %v2360_v51 = vadd.f32 %v2359_v34, %v1921_v40 }
 0x82b   :  { %2372 = vst [vmem:[%s4769_s6 + $0x50] sm:$0xff] %v2358_v63 }
 0x82c   :  { %2373 = vst [vmem:[%s4769_s6 + $0x58] sm:$0xff] %v2360_v51 }

</bundles_post_ra>
